<compile_context>
chip_gen: v7x
topology: tpu7x:2x2x1
jax: 0.10.0
libtpu: 0.0.40
codegen_flags: <defaults>
</compile_context>

<pallas_src>
import jax
import jax.numpy as jnp
from jax import lax
from jax.experimental import pallas as pl
from jax.experimental.pallas import tpu as pltpu


def seq2seq_kernel(src_emb_ref,                      # [S*B, E]  f32 (encoder embeddings, time-flattened)
                   w_ih_e_ref, w_hh_e_ref, b_e_ref,  # [E,4H], [H,4H], [1,4H]
                   dec_emb_ref,                      # [Vp, E]  (rows >= V are zero)
                   w_ih_d_ref, w_hh_d_ref, b_d_ref,  # [E,4H], [H,4H], [1,4H]
                   w_fc_ref, b_fc_ref,               # [H, Vp], [1, Vp] (pad cols: w=0, b=-1e30)
                   trg_ref,                          # [T, B, 1] int32 (VMEM)
                   tf_ref,                           # [T]       int32 (SMEM) teacher-force mask
                   out_ref):                         # [T, B, Vp] f32
    SB, _ = src_emb_ref.shape
    T, B, _ = trg_ref.shape
    S = SB // B
    H = w_hh_e_ref.shape[0]
    Vp = w_fc_ref.shape[1]

    # ---- hoisted weight loads / bias broadcasts (once, outside all loops) ----
    w_hh_e = w_hh_e_ref[...]
    w_hh_d = w_hh_d_ref[...]
    w_fc = w_fc_ref[...]
    b_fc_bc = jnp.broadcast_to(b_fc_ref[...], (B, Vp))

    # encoder input projection: one MXU op for all timesteps, bias folded in.
    src_proj = (jnp.dot(src_emb_ref[...], w_ih_e_ref[...],
                        preferred_element_type=jnp.float32)
                + jnp.broadcast_to(b_e_ref[...], (SB, 4 * H)))        # [S*B, 4H]

    # decoder embedding fused with input projection (+ bias folded), one MXU op.
    emb_proj = (jnp.dot(dec_emb_ref[...], w_ih_d_ref[...],
                        preferred_element_type=jnp.float32)
                + jnp.broadcast_to(b_d_ref[...], (Vp, 4 * H)))        # [Vp, 4H]

    def gates_to_hc(gates, c):
        # gates is [B, 4H] = one f32 vreg at these shapes: 2 full-vreg EUP pushes,
        # then lane-select the i/f/g/o slabs (PyTorch gate order i,f,g,o).
        sg = jax.nn.sigmoid(gates)
        th = jnp.tanh(gates)
        i = sg[:, 0 * H:1 * H]
        f = sg[:, 1 * H:2 * H]
        g = th[:, 2 * H:3 * H]
        o = sg[:, 3 * H:4 * H]
        c_new = f * c + i * g
        h_new = o * jnp.tanh(c_new)
        return h_new, c_new

    # ---------------- encoder (fully unrolled) ----------------
    h = jnp.zeros((B, H), jnp.float32)
    c = jnp.zeros((B, H), jnp.float32)
    for t in range(S):
        gates = (src_proj[t * B:(t + 1) * B, :]
                 + jnp.dot(h, w_hh_e, preferred_element_type=jnp.float32))
        h, c = gates_to_hc(gates, c)

    # outputs[0] is never written in the torch loop -> keep it zero.
    out_ref[0] = jnp.zeros((B, Vp), jnp.float32)

    col_iota = lax.broadcasted_iota(jnp.int32, (B, Vp), 1)
    inp = trg_ref[0]                                                   # [B, 1] int32

    # ---------------- decoder (fully unrolled) ----------------
    for t in range(1, T):
        onehot = (col_iota == inp).astype(jnp.float32)                 # [B, Vp]
        gates = (jnp.dot(onehot, emb_proj, preferred_element_type=jnp.float32)
                 + jnp.dot(h, w_hh_d, preferred_element_type=jnp.float32))
        h, c = gates_to_hc(gates, c)
        pred = jnp.dot(h, w_fc, preferred_element_type=jnp.float32) + b_fc_bc  # [B, Vp]
        out_ref[t] = pred                                              # lane-dense full-vreg store

        # top1 = argmax(pred) (first-max index); pad columns sit at -1e30 so never win.
        m = jnp.max(pred, axis=1, keepdims=True)
        top1 = jnp.min(jnp.where(pred == m, col_iota, Vp),
                       axis=1, keepdims=True).astype(jnp.int32)        # [B, 1]

        tf = tf_ref[t]                                                 # scalar from SMEM
        inp = jnp.where(tf > 0, trg_ref[t], top1)                      # [B, 1]


def seq2seq_forward(src_tokens, trg_tokens, params, tf_mask):
    S, B = src_tokens.shape
    T, _ = trg_tokens.shape
    E = params["enc_emb"].shape[1]
    H = params["w_hh_e"].shape[0]
    V = params["w_fc"].shape[1]
    Vp = ((V + 127) // 128) * 128   # lane-dense vocab width

    # glue: encoder embedding lookup + time-flatten (free reshape in XLA)
    src_emb = jnp.take(params["enc_emb"], src_tokens, axis=0).reshape(S * B, E)

    # pad vocab-sized tensors to Vp: zero embedding rows, zero fc columns,
    # -1e30 fc bias so padded logits never win the argmax.
    dec_emb_p = jnp.zeros((Vp, E), jnp.float32).at[:V].set(params["dec_emb"])
    w_fc_p = jnp.zeros((H, Vp), jnp.float32).at[:, :V].set(params["w_fc"])
    b_fc_p = jnp.full((1, Vp), -1e30, jnp.float32).at[:, :V].set(params["b_fc"])

    trg_col = trg_tokens.astype(jnp.int32)[:, :, None]                 # [T, B, 1]

    vmem = pl.BlockSpec(memory_space=pltpu.VMEM)
    smem = pl.BlockSpec(memory_space=pltpu.SMEM)

    out_pad = pl.pallas_call(
        seq2seq_kernel,
        out_shape=jax.ShapeDtypeStruct((T, B, Vp), jnp.float32),
        in_specs=[vmem] * 11 + [smem],
        out_specs=vmem,
    )(src_emb,
      params["w_ih_e"], params["w_hh_e"], params["b_e"],
      dec_emb_p,
      params["w_ih_d"], params["w_hh_d"], params["b_d"],
      w_fc_p, b_fc_p,
      trg_col,
      tf_mask.astype(jnp.int32))

    return out_pad[:, :, :V]


# ---------------- pure-JAX reference (sanity check) ----------------
def seq2seq_reference(src_tokens, trg_tokens, params, tf_mask):
    H = params["w_hh_e"].shape[0]
    T, B = trg_tokens.shape
    V = params["w_fc"].shape[1]

    def lstm(x, h, c, w_ih, w_hh, b):
        gates = x @ w_ih + h @ w_hh + b
        i = jax.nn.sigmoid(gates[:, 0 * H:1 * H])
        f = jax.nn.sigmoid(gates[:, 1 * H:2 * H])
        g = jnp.tanh(gates[:, 2 * H:3 * H])
        o = jax.nn.sigmoid(gates[:, 3 * H:4 * H])
        c = f * c + i * g
        return o * jnp.tanh(c), c

    src_emb = params["enc_emb"][src_tokens]
    h = jnp.zeros((B, H), jnp.float32)
    c = jnp.zeros((B, H), jnp.float32)
    for t in range(src_tokens.shape[0]):
        h, c = lstm(src_emb[t], h, c, params["w_ih_e"], params["w_hh_e"], params["b_e"])

    outputs = jnp.zeros((T, B, V), jnp.float32)
    inp = trg_tokens[0]
    for t in range(1, T):
        x = params["dec_emb"][inp]
        h, c = lstm(x, h, c, params["w_ih_d"], params["w_hh_d"], params["b_d"])
        pred = h @ params["w_fc"] + params["b_fc"]
        outputs = outputs.at[t].set(pred)
        top1 = jnp.argmax(pred, axis=1).astype(jnp.int32)
        inp = jnp.where(tf_mask[t] > 0, trg_tokens[t], top1)
    return outputs


if __name__ == "__main__":
    key = jax.random.PRNGKey(0)

    SRC_LEN, TRG_LEN, BATCH = 6, 7, 8
    EMB, HID, SRC_VOCAB, TRG_VOCAB = 16, 32, 16, 16
    TEACHER_FORCING_RATIO = 0.5

    ks = jax.random.split(key, 16)
    scale = 0.1
    params = {
        "enc_emb": scale * jax.random.normal(ks[0], (SRC_VOCAB, EMB), jnp.float32),
        "w_ih_e": scale * jax.random.normal(ks[1], (EMB, 4 * HID), jnp.float32),
        "w_hh_e": scale * jax.random.normal(ks[2], (HID, 4 * HID), jnp.float32),
        "b_e":    scale * jax.random.normal(ks[3], (1, 4 * HID), jnp.float32),
        "dec_emb": scale * jax.random.normal(ks[4], (TRG_VOCAB, EMB), jnp.float32),
        "w_ih_d": scale * jax.random.normal(ks[5], (EMB, 4 * HID), jnp.float32),
        "w_hh_d": scale * jax.random.normal(ks[6], (HID, 4 * HID), jnp.float32),
        "b_d":    scale * jax.random.normal(ks[7], (1, 4 * HID), jnp.float32),
        "w_fc":   scale * jax.random.normal(ks[8], (HID, TRG_VOCAB), jnp.float32),
        "b_fc":   scale * jax.random.normal(ks[9], (1, TRG_VOCAB), jnp.float32),
    }

    src = jax.random.randint(ks[10], (SRC_LEN, BATCH), 0, SRC_VOCAB, jnp.int32)
    trg = jax.random.randint(ks[11], (TRG_LEN, BATCH), 0, TRG_VOCAB, jnp.int32)
    # deterministic replacement for python `random.random() < teacher_forcing_ratio`
    tf_mask = (jax.random.uniform(ks[12], (TRG_LEN,)) < TEACHER_FORCING_RATIO).astype(jnp.int32)

    out = seq2seq_forward(src, trg, params, tf_mask)
    out = jax.block_until_ready(out)

    ref = seq2seq_reference(src, trg, params, tf_mask)
    assert out.shape == (TRG_LEN, BATCH, TRG_VOCAB)
    assert jnp.allclose(out, ref, atol=1e-4, rtol=1e-4), "mismatch vs JAX reference"

    print("KERNEL_OK")
</pallas_src>

<mosaic_0001>
module attributes {stable_mosaic.version = 11 : i64} {
  func.func @seq2seq_kernel(%arg0: memref<48x16xf32, #tpu.memory_space<vmem>>, %arg1: memref<16x128xf32, #tpu.memory_space<vmem>>, %arg2: memref<32x128xf32, #tpu.memory_space<vmem>>, %arg3: memref<1x128xf32, #tpu.memory_space<vmem>>, %arg4: memref<128x16xf32, #tpu.memory_space<vmem>>, %arg5: memref<16x128xf32, #tpu.memory_space<vmem>>, %arg6: memref<32x128xf32, #tpu.memory_space<vmem>>, %arg7: memref<1x128xf32, #tpu.memory_space<vmem>>, %arg8: memref<32x128xf32, #tpu.memory_space<vmem>>, %arg9: memref<1x128xf32, #tpu.memory_space<vmem>>, %arg10: memref<7x8x1xi32, #tpu.memory_space<vmem>>, %arg11: memref<7xi32, #tpu.memory_space<smem>>, %arg12: memref<7x8x128xf32, #tpu.memory_space<vmem>>) attributes {dimension_semantics = [], scalar_prefetch = 0 : i64, scratch_operands = 0 : i64, tpu.core_type = #tpu.core_type<tc>} {
    %c0 = arith.constant 0 : index
    %c0_0 = arith.constant 0 : index
    %0 = vector.load %arg2[%c0, %c0_0] : memref<32x128xf32, #tpu.memory_space<vmem>>, vector<32x128xf32>
    %c0_1 = arith.constant 0 : index
    %c0_2 = arith.constant 0 : index
    %1 = vector.load %arg6[%c0_1, %c0_2] : memref<32x128xf32, #tpu.memory_space<vmem>>, vector<32x128xf32>
    %c0_3 = arith.constant 0 : index
    %c0_4 = arith.constant 0 : index
    %2 = vector.load %arg8[%c0_3, %c0_4] : memref<32x128xf32, #tpu.memory_space<vmem>>, vector<32x128xf32>
    %c0_5 = arith.constant 0 : index
    %c0_6 = arith.constant 0 : index
    %3 = vector.load %arg9[%c0_5, %c0_6] : memref<1x128xf32, #tpu.memory_space<vmem>>, vector<1x128xf32>
    %4 = vector.shape_cast %3 : vector<1x128xf32> to vector<1x128xf32>
    %5 = vector.broadcast %4 : vector<1x128xf32> to vector<8x128xf32>
    %c0_7 = arith.constant 0 : index
    %c0_8 = arith.constant 0 : index
    %6 = vector.load %arg0[%c0_7, %c0_8] : memref<48x16xf32, #tpu.memory_space<vmem>>, vector<48x16xf32>
    %c0_9 = arith.constant 0 : index
    %c0_10 = arith.constant 0 : index
    %7 = vector.load %arg1[%c0_9, %c0_10] : memref<16x128xf32, #tpu.memory_space<vmem>>, vector<16x128xf32>
    %cst = arith.constant dense<0.000000e+00> : vector<48x128xf32>
    %8 = tpu.matmul %6, %7, %cst {dimension_numbers = #tpu.dot_dimension_numbers<[1], [0], [0], [1], [0, 0, 1, 1], [], []>} : vector<48x16xf32>, vector<16x128xf32>, vector<48x128xf32> -> vector<48x128xf32>
    %c0_11 = arith.constant 0 : index
    %c0_12 = arith.constant 0 : index
    %9 = vector.load %arg3[%c0_11, %c0_12] : memref<1x128xf32, #tpu.memory_space<vmem>>, vector<1x128xf32>
    %10 = vector.shape_cast %9 : vector<1x128xf32> to vector<1x128xf32>
    %11 = vector.broadcast %10 : vector<1x128xf32> to vector<48x128xf32>
    %12 = arith.addf %8, %11 : vector<48x128xf32>
    %c0_13 = arith.constant 0 : index
    %c0_14 = arith.constant 0 : index
    %13 = vector.load %arg4[%c0_13, %c0_14] : memref<128x16xf32, #tpu.memory_space<vmem>>, vector<128x16xf32>
    %c0_15 = arith.constant 0 : index
    %c0_16 = arith.constant 0 : index
    %14 = vector.load %arg5[%c0_15, %c0_16] : memref<16x128xf32, #tpu.memory_space<vmem>>, vector<16x128xf32>
    %cst_17 = arith.constant dense<0.000000e+00> : vector<128x128xf32>
    %15 = tpu.matmul %13, %14, %cst_17 {dimension_numbers = #tpu.dot_dimension_numbers<[1], [0], [0], [1], [0, 0, 1, 1], [], []>} : vector<128x16xf32>, vector<16x128xf32>, vector<128x128xf32> -> vector<128x128xf32>
    %c0_18 = arith.constant 0 : index
    %c0_19 = arith.constant 0 : index
    %16 = vector.load %arg7[%c0_18, %c0_19] : memref<1x128xf32, #tpu.memory_space<vmem>>, vector<1x128xf32>
    %17 = vector.shape_cast %16 : vector<1x128xf32> to vector<1x128xf32>
    %18 = vector.broadcast %17 : vector<1x128xf32> to vector<128x128xf32>
    %19 = arith.addf %15, %18 : vector<128x128xf32>
    %cst_20 = arith.constant 0.000000e+00 : f32
    %20 = vector.broadcast %cst_20 : f32 to vector<8x32xf32>
    %cst_21 = arith.constant 0.000000e+00 : f32
    %21 = vector.broadcast %cst_21 : f32 to vector<8x32xf32>
    %22 = vector.extract_strided_slice %12 {offsets = [0, 0], sizes = [8, 128], strides = [1, 1]} : vector<48x128xf32> to vector<8x128xf32>
    %cst_22 = arith.constant dense<0.000000e+00> : vector<8x128xf32>
    %23 = tpu.matmul %20, %0, %cst_22 {dimension_numbers = #tpu.dot_dimension_numbers<[1], [0], [0], [1], [0, 0, 1, 1], [], []>} : vector<8x32xf32>, vector<32x128xf32>, vector<8x128xf32> -> vector<8x128xf32>
    %24 = arith.addf %22, %23 : vector<8x128xf32>
    %25 = arith.negf %24 : vector<8x128xf32>
    %26 = math.exp %25 : vector<8x128xf32>
    %cst_23 = arith.constant 1.000000e+00 : f32
    %27 = vector.broadcast %cst_23 : f32 to vector<8x128xf32>
    %28 = arith.addf %27, %26 : vector<8x128xf32>
    %29 = arith.divf %27, %28 : vector<8x128xf32>
    %30 = math.tanh %24 : vector<8x128xf32>
    %31 = vector.extract_strided_slice %29 {offsets = [0, 0], sizes = [8, 32], strides = [1, 1]} : vector<8x128xf32> to vector<8x32xf32>
    %32 = vector.extract_strided_slice %29 {offsets = [0, 32], sizes = [8, 32], strides = [1, 1]} : vector<8x128xf32> to vector<8x32xf32>
    %33 = vector.extract_strided_slice %30 {offsets = [0, 64], sizes = [8, 32], strides = [1, 1]} : vector<8x128xf32> to vector<8x32xf32>
    %34 = vector.extract_strided_slice %29 {offsets = [0, 96], sizes = [8, 32], strides = [1, 1]} : vector<8x128xf32> to vector<8x32xf32>
    %35 = arith.mulf %32, %21 : vector<8x32xf32>
    %36 = arith.mulf %31, %33 : vector<8x32xf32>
    %37 = arith.addf %35, %36 : vector<8x32xf32>
    %38 = math.tanh %37 : vector<8x32xf32>
    %39 = arith.mulf %34, %38 : vector<8x32xf32>
    %40 = vector.extract_strided_slice %12 {offsets = [8, 0], sizes = [8, 128], strides = [1, 1]} : vector<48x128xf32> to vector<8x128xf32>
    %cst_24 = arith.constant dense<0.000000e+00> : vector<8x128xf32>
    %41 = tpu.matmul %39, %0, %cst_24 {dimension_numbers = #tpu.dot_dimension_numbers<[1], [0], [0], [1], [0, 0, 1, 1], [], []>} : vector<8x32xf32>, vector<32x128xf32>, vector<8x128xf32> -> vector<8x128xf32>
    %42 = arith.addf %40, %41 : vector<8x128xf32>
    %43 = arith.negf %42 : vector<8x128xf32>
    %44 = math.exp %43 : vector<8x128xf32>
    %cst_25 = arith.constant 1.000000e+00 : f32
    %45 = vector.broadcast %cst_25 : f32 to vector<8x128xf32>
    %46 = arith.addf %45, %44 : vector<8x128xf32>
    %47 = arith.divf %45, %46 : vector<8x128xf32>
    %48 = math.tanh %42 : vector<8x128xf32>
    %49 = vector.extract_strided_slice %47 {offsets = [0, 0], sizes = [8, 32], strides = [1, 1]} : vector<8x128xf32> to vector<8x32xf32>
    %50 = vector.extract_strided_slice %47 {offsets = [0, 32], sizes = [8, 32], strides = [1, 1]} : vector<8x128xf32> to vector<8x32xf32>
    %51 = vector.extract_strided_slice %48 {offsets = [0, 64], sizes = [8, 32], strides = [1, 1]} : vector<8x128xf32> to vector<8x32xf32>
    %52 = vector.extract_strided_slice %47 {offsets = [0, 96], sizes = [8, 32], strides = [1, 1]} : vector<8x128xf32> to vector<8x32xf32>
    %53 = arith.mulf %50, %37 : vector<8x32xf32>
    %54 = arith.mulf %49, %51 : vector<8x32xf32>
    %55 = arith.addf %53, %54 : vector<8x32xf32>
    %56 = math.tanh %55 : vector<8x32xf32>
    %57 = arith.mulf %52, %56 : vector<8x32xf32>
    %58 = vector.extract_strided_slice %12 {offsets = [16, 0], sizes = [8, 128], strides = [1, 1]} : vector<48x128xf32> to vector<8x128xf32>
    %cst_26 = arith.constant dense<0.000000e+00> : vector<8x128xf32>
    %59 = tpu.matmul %57, %0, %cst_26 {dimension_numbers = #tpu.dot_dimension_numbers<[1], [0], [0], [1], [0, 0, 1, 1], [], []>} : vector<8x32xf32>, vector<32x128xf32>, vector<8x128xf32> -> vector<8x128xf32>
    %60 = arith.addf %58, %59 : vector<8x128xf32>
    %61 = arith.negf %60 : vector<8x128xf32>
    %62 = math.exp %61 : vector<8x128xf32>
    %cst_27 = arith.constant 1.000000e+00 : f32
    %63 = vector.broadcast %cst_27 : f32 to vector<8x128xf32>
    %64 = arith.addf %63, %62 : vector<8x128xf32>
    %65 = arith.divf %63, %64 : vector<8x128xf32>
    %66 = math.tanh %60 : vector<8x128xf32>
    %67 = vector.extract_strided_slice %65 {offsets = [0, 0], sizes = [8, 32], strides = [1, 1]} : vector<8x128xf32> to vector<8x32xf32>
    %68 = vector.extract_strided_slice %65 {offsets = [0, 32], sizes = [8, 32], strides = [1, 1]} : vector<8x128xf32> to vector<8x32xf32>
    %69 = vector.extract_strided_slice %66 {offsets = [0, 64], sizes = [8, 32], strides = [1, 1]} : vector<8x128xf32> to vector<8x32xf32>
    %70 = vector.extract_strided_slice %65 {offsets = [0, 96], sizes = [8, 32], strides = [1, 1]} : vector<8x128xf32> to vector<8x32xf32>
    %71 = arith.mulf %68, %55 : vector<8x32xf32>
    %72 = arith.mulf %67, %69 : vector<8x32xf32>
    %73 = arith.addf %71, %72 : vector<8x32xf32>
    %74 = math.tanh %73 : vector<8x32xf32>
    %75 = arith.mulf %70, %74 : vector<8x32xf32>
    %76 = vector.extract_strided_slice %12 {offsets = [24, 0], sizes = [8, 128], strides = [1, 1]} : vector<48x128xf32> to vector<8x128xf32>
    %cst_28 = arith.constant dense<0.000000e+00> : vector<8x128xf32>
    %77 = tpu.matmul %75, %0, %cst_28 {dimension_numbers = #tpu.dot_dimension_numbers<[1], [0], [0], [1], [0, 0, 1, 1], [], []>} : vector<8x32xf32>, vector<32x128xf32>, vector<8x128xf32> -> vector<8x128xf32>
    %78 = arith.addf %76, %77 : vector<8x128xf32>
    %79 = arith.negf %78 : vector<8x128xf32>
    %80 = math.exp %79 : vector<8x128xf32>
    %cst_29 = arith.constant 1.000000e+00 : f32
    %81 = vector.broadcast %cst_29 : f32 to vector<8x128xf32>
    %82 = arith.addf %81, %80 : vector<8x128xf32>
    %83 = arith.divf %81, %82 : vector<8x128xf32>
    %84 = math.tanh %78 : vector<8x128xf32>
    %85 = vector.extract_strided_slice %83 {offsets = [0, 0], sizes = [8, 32], strides = [1, 1]} : vector<8x128xf32> to vector<8x32xf32>
    %86 = vector.extract_strided_slice %83 {offsets = [0, 32], sizes = [8, 32], strides = [1, 1]} : vector<8x128xf32> to vector<8x32xf32>
    %87 = vector.extract_strided_slice %84 {offsets = [0, 64], sizes = [8, 32], strides = [1, 1]} : vector<8x128xf32> to vector<8x32xf32>
    %88 = vector.extract_strided_slice %83 {offsets = [0, 96], sizes = [8, 32], strides = [1, 1]} : vector<8x128xf32> to vector<8x32xf32>
    %89 = arith.mulf %86, %73 : vector<8x32xf32>
    %90 = arith.mulf %85, %87 : vector<8x32xf32>
    %91 = arith.addf %89, %90 : vector<8x32xf32>
    %92 = math.tanh %91 : vector<8x32xf32>
    %93 = arith.mulf %88, %92 : vector<8x32xf32>
    %94 = vector.extract_strided_slice %12 {offsets = [32, 0], sizes = [8, 128], strides = [1, 1]} : vector<48x128xf32> to vector<8x128xf32>
    %cst_30 = arith.constant dense<0.000000e+00> : vector<8x128xf32>
    %95 = tpu.matmul %93, %0, %cst_30 {dimension_numbers = #tpu.dot_dimension_numbers<[1], [0], [0], [1], [0, 0, 1, 1], [], []>} : vector<8x32xf32>, vector<32x128xf32>, vector<8x128xf32> -> vector<8x128xf32>
    %96 = arith.addf %94, %95 : vector<8x128xf32>
    %97 = arith.negf %96 : vector<8x128xf32>
    %98 = math.exp %97 : vector<8x128xf32>
    %cst_31 = arith.constant 1.000000e+00 : f32
    %99 = vector.broadcast %cst_31 : f32 to vector<8x128xf32>
    %100 = arith.addf %99, %98 : vector<8x128xf32>
    %101 = arith.divf %99, %100 : vector<8x128xf32>
    %102 = math.tanh %96 : vector<8x128xf32>
    %103 = vector.extract_strided_slice %101 {offsets = [0, 0], sizes = [8, 32], strides = [1, 1]} : vector<8x128xf32> to vector<8x32xf32>
    %104 = vector.extract_strided_slice %101 {offsets = [0, 32], sizes = [8, 32], strides = [1, 1]} : vector<8x128xf32> to vector<8x32xf32>
    %105 = vector.extract_strided_slice %102 {offsets = [0, 64], sizes = [8, 32], strides = [1, 1]} : vector<8x128xf32> to vector<8x32xf32>
    %106 = vector.extract_strided_slice %101 {offsets = [0, 96], sizes = [8, 32], strides = [1, 1]} : vector<8x128xf32> to vector<8x32xf32>
    %107 = arith.mulf %104, %91 : vector<8x32xf32>
    %108 = arith.mulf %103, %105 : vector<8x32xf32>
    %109 = arith.addf %107, %108 : vector<8x32xf32>
    %110 = math.tanh %109 : vector<8x32xf32>
    %111 = arith.mulf %106, %110 : vector<8x32xf32>
    %112 = vector.extract_strided_slice %12 {offsets = [40, 0], sizes = [8, 128], strides = [1, 1]} : vector<48x128xf32> to vector<8x128xf32>
    %cst_32 = arith.constant dense<0.000000e+00> : vector<8x128xf32>
    %113 = tpu.matmul %111, %0, %cst_32 {dimension_numbers = #tpu.dot_dimension_numbers<[1], [0], [0], [1], [0, 0, 1, 1], [], []>} : vector<8x32xf32>, vector<32x128xf32>, vector<8x128xf32> -> vector<8x128xf32>
    %114 = arith.addf %112, %113 : vector<8x128xf32>
    %115 = arith.negf %114 : vector<8x128xf32>
    %116 = math.exp %115 : vector<8x128xf32>
    %cst_33 = arith.constant 1.000000e+00 : f32
    %117 = vector.broadcast %cst_33 : f32 to vector<8x128xf32>
    %118 = arith.addf %117, %116 : vector<8x128xf32>
    %119 = arith.divf %117, %118 : vector<8x128xf32>
    %120 = math.tanh %114 : vector<8x128xf32>
    %121 = vector.extract_strided_slice %119 {offsets = [0, 0], sizes = [8, 32], strides = [1, 1]} : vector<8x128xf32> to vector<8x32xf32>
    %122 = vector.extract_strided_slice %119 {offsets = [0, 32], sizes = [8, 32], strides = [1, 1]} : vector<8x128xf32> to vector<8x32xf32>
    %123 = vector.extract_strided_slice %120 {offsets = [0, 64], sizes = [8, 32], strides = [1, 1]} : vector<8x128xf32> to vector<8x32xf32>
    %124 = vector.extract_strided_slice %119 {offsets = [0, 96], sizes = [8, 32], strides = [1, 1]} : vector<8x128xf32> to vector<8x32xf32>
    %125 = arith.mulf %122, %109 : vector<8x32xf32>
    %126 = arith.mulf %121, %123 : vector<8x32xf32>
    %127 = arith.addf %125, %126 : vector<8x32xf32>
    %128 = math.tanh %127 : vector<8x32xf32>
    %129 = arith.mulf %124, %128 : vector<8x32xf32>
    %cst_34 = arith.constant 0.000000e+00 : f32
    %130 = vector.broadcast %cst_34 : f32 to vector<8x128xf32>
    %c0_35 = arith.constant 0 : index
    %c0_36 = arith.constant 0 : index
    %c0_37 = arith.constant 0 : index
    %131 = vector.load %arg12[%c0_35, %c0_36, %c0_37] : memref<7x8x128xf32, #tpu.memory_space<vmem>>, vector<1x8x128xf32>
    %132 = vector.shape_cast %131 : vector<1x8x128xf32> to vector<8x128xf32>
    %133 = vector.shape_cast %130 : vector<8x128xf32> to vector<1x8x128xf32>
    tpu.vector_store %arg12[%c0_35, %c0_36, %c0_37], %133 {strides = array<i32>} : memref<7x8x128xf32, #tpu.memory_space<vmem>>, vector<1x8x128xf32>,
    %134 = tpu.iota {dimensions = array<i32: 1>} : vector<8x128xi32>
    %c0_38 = arith.constant 0 : index
    %c0_39 = arith.constant 0 : index
    %c0_40 = arith.constant 0 : index
    %135 = vector.load %arg10[%c0_38, %c0_39, %c0_40] : memref<7x8x1xi32, #tpu.memory_space<vmem>>, vector<1x8x1xi32>
    %136 = vector.shape_cast %135 : vector<1x8x1xi32> to vector<8x1xi32>
    %137 = vector.broadcast %136 : vector<8x1xi32> to vector<8x128xi32>
    %138 = arith.cmpi eq, %134, %137 : vector<8x128xi32>
    %139 = arith.extui %138 : vector<8x128xi1> to vector<8x128xi32>
    %140 = arith.sitofp %139 : vector<8x128xi32> to vector<8x128xf32>
    %cst_41 = arith.constant dense<0.000000e+00> : vector<8x128xf32>
    %141 = tpu.matmul %140, %19, %cst_41 {dimension_numbers = #tpu.dot_dimension_numbers<[1], [0], [0], [1], [0, 0, 1, 1], [], []>} : vector<8x128xf32>, vector<128x128xf32>, vector<8x128xf32> -> vector<8x128xf32>
    %cst_42 = arith.constant dense<0.000000e+00> : vector<8x128xf32>
    %142 = tpu.matmul %129, %1, %cst_42 {dimension_numbers = #tpu.dot_dimension_numbers<[1], [0], [0], [1], [0, 0, 1, 1], [], []>} : vector<8x32xf32>, vector<32x128xf32>, vector<8x128xf32> -> vector<8x128xf32>
    %143 = arith.addf %141, %142 : vector<8x128xf32>
    %144 = arith.negf %143 : vector<8x128xf32>
    %145 = math.exp %144 : vector<8x128xf32>
    %cst_43 = arith.constant 1.000000e+00 : f32
    %146 = vector.broadcast %cst_43 : f32 to vector<8x128xf32>
    %147 = arith.addf %146, %145 : vector<8x128xf32>
    %148 = arith.divf %146, %147 : vector<8x128xf32>
    %149 = math.tanh %143 : vector<8x128xf32>
    %150 = vector.extract_strided_slice %148 {offsets = [0, 0], sizes = [8, 32], strides = [1, 1]} : vector<8x128xf32> to vector<8x32xf32>
    %151 = vector.extract_strided_slice %148 {offsets = [0, 32], sizes = [8, 32], strides = [1, 1]} : vector<8x128xf32> to vector<8x32xf32>
    %152 = vector.extract_strided_slice %149 {offsets = [0, 64], sizes = [8, 32], strides = [1, 1]} : vector<8x128xf32> to vector<8x32xf32>
    %153 = vector.extract_strided_slice %148 {offsets = [0, 96], sizes = [8, 32], strides = [1, 1]} : vector<8x128xf32> to vector<8x32xf32>
    %154 = arith.mulf %151, %127 : vector<8x32xf32>
    %155 = arith.mulf %150, %152 : vector<8x32xf32>
    %156 = arith.addf %154, %155 : vector<8x32xf32>
    %157 = math.tanh %156 : vector<8x32xf32>
    %158 = arith.mulf %153, %157 : vector<8x32xf32>
    %cst_44 = arith.constant dense<0.000000e+00> : vector<8x128xf32>
    %159 = tpu.matmul %158, %2, %cst_44 {dimension_numbers = #tpu.dot_dimension_numbers<[1], [0], [0], [1], [0, 0, 1, 1], [], []>} : vector<8x32xf32>, vector<32x128xf32>, vector<8x128xf32> -> vector<8x128xf32>
    %160 = arith.addf %159, %5 : vector<8x128xf32>
    %c1 = arith.constant 1 : index
    %c0_45 = arith.constant 0 : index
    %c0_46 = arith.constant 0 : index
    %161 = vector.load %arg12[%c1, %c0_45, %c0_46] : memref<7x8x128xf32, #tpu.memory_space<vmem>>, vector<1x8x128xf32>
    %162 = vector.shape_cast %161 : vector<1x8x128xf32> to vector<8x128xf32>
    %163 = vector.shape_cast %160 : vector<8x128xf32> to vector<1x8x128xf32>
    tpu.vector_store %arg12[%c1, %c0_45, %c0_46], %163 {strides = array<i32>} : memref<7x8x128xf32, #tpu.memory_space<vmem>>, vector<1x8x128xf32>,
    %cst_47 = arith.constant dense<0xFF800000> : vector<8xf32>
    %164 = vector.multi_reduction <maximumf>, %160, %cst_47 [1] : vector<8x128xf32> to vector<8xf32>
    %165 = vector.shape_cast %164 : vector<8xf32> to vector<8x1xf32>
    %166 = vector.broadcast %165 : vector<8x1xf32> to vector<8x128xf32>
    %167 = arith.cmpf oeq, %160, %166 : vector<8x128xf32>
    %c128_i32 = arith.constant 128 : i32
    %168 = vector.broadcast %c128_i32 : i32 to vector<8x128xi32>
    %169 = arith.select %167, %134, %168 : vector<8x128xi1>, vector<8x128xi32>
    %cst_48 = arith.constant dense<2147483647> : vector<8xi32>
    %170 = vector.multi_reduction <minsi>, %169, %cst_48 [1] : vector<8x128xi32> to vector<8xi32>
    %171 = vector.shape_cast %170 : vector<8xi32> to vector<8x1xi32>
    %c1_49 = arith.constant 1 : index
    %172 = memref.load %arg11[%c1_49] : memref<7xi32, #tpu.memory_space<smem>>
    %c0_i32 = arith.constant 0 : i32
    %173 = arith.cmpi sgt, %172, %c0_i32 : i32
    %c1_50 = arith.constant 1 : index
    %c0_51 = arith.constant 0 : index
    %c0_52 = arith.constant 0 : index
    %174 = vector.load %arg10[%c1_50, %c0_51, %c0_52] : memref<7x8x1xi32, #tpu.memory_space<vmem>>, vector<1x8x1xi32>
    %175 = vector.shape_cast %174 : vector<1x8x1xi32> to vector<8x1xi32>
    %176 = arith.select %173, %175, %171 : vector<8x1xi32>
    %177 = vector.broadcast %176 : vector<8x1xi32> to vector<8x128xi32>
    %178 = arith.cmpi eq, %134, %177 : vector<8x128xi32>
    %179 = arith.extui %178 : vector<8x128xi1> to vector<8x128xi32>
    %180 = arith.sitofp %179 : vector<8x128xi32> to vector<8x128xf32>
    %cst_53 = arith.constant dense<0.000000e+00> : vector<8x128xf32>
    %181 = tpu.matmul %180, %19, %cst_53 {dimension_numbers = #tpu.dot_dimension_numbers<[1], [0], [0], [1], [0, 0, 1, 1], [], []>} : vector<8x128xf32>, vector<128x128xf32>, vector<8x128xf32> -> vector<8x128xf32>
    %cst_54 = arith.constant dense<0.000000e+00> : vector<8x128xf32>
    %182 = tpu.matmul %158, %1, %cst_54 {dimension_numbers = #tpu.dot_dimension_numbers<[1], [0], [0], [1], [0, 0, 1, 1], [], []>} : vector<8x32xf32>, vector<32x128xf32>, vector<8x128xf32> -> vector<8x128xf32>
    %183 = arith.addf %181, %182 : vector<8x128xf32>
    %184 = arith.negf %183 : vector<8x128xf32>
    %185 = math.exp %184 : vector<8x128xf32>
    %cst_55 = arith.constant 1.000000e+00 : f32
    %186 = vector.broadcast %cst_55 : f32 to vector<8x128xf32>
    %187 = arith.addf %186, %185 : vector<8x128xf32>
    %188 = arith.divf %186, %187 : vector<8x128xf32>
    %189 = math.tanh %183 : vector<8x128xf32>
    %190 = vector.extract_strided_slice %188 {offsets = [0, 0], sizes = [8, 32], strides = [1, 1]} : vector<8x128xf32> to vector<8x32xf32>
    %191 = vector.extract_strided_slice %188 {offsets = [0, 32], sizes = [8, 32], strides = [1, 1]} : vector<8x128xf32> to vector<8x32xf32>
    %192 = vector.extract_strided_slice %189 {offsets = [0, 64], sizes = [8, 32], strides = [1, 1]} : vector<8x128xf32> to vector<8x32xf32>
    %193 = vector.extract_strided_slice %188 {offsets = [0, 96], sizes = [8, 32], strides = [1, 1]} : vector<8x128xf32> to vector<8x32xf32>
    %194 = arith.mulf %191, %156 : vector<8x32xf32>
    %195 = arith.mulf %190, %192 : vector<8x32xf32>
    %196 = arith.addf %194, %195 : vector<8x32xf32>
    %197 = math.tanh %196 : vector<8x32xf32>
    %198 = arith.mulf %193, %197 : vector<8x32xf32>
    %cst_56 = arith.constant dense<0.000000e+00> : vector<8x128xf32>
    %199 = tpu.matmul %198, %2, %cst_56 {dimension_numbers = #tpu.dot_dimension_numbers<[1], [0], [0], [1], [0, 0, 1, 1], [], []>} : vector<8x32xf32>, vector<32x128xf32>, vector<8x128xf32> -> vector<8x128xf32>
    %200 = arith.addf %199, %5 : vector<8x128xf32>
    %c2 = arith.constant 2 : index
    %c0_57 = arith.constant 0 : index
    %c0_58 = arith.constant 0 : index
    %201 = vector.load %arg12[%c2, %c0_57, %c0_58] : memref<7x8x128xf32, #tpu.memory_space<vmem>>, vector<1x8x128xf32>
    %202 = vector.shape_cast %201 : vector<1x8x128xf32> to vector<8x128xf32>
    %203 = vector.shape_cast %200 : vector<8x128xf32> to vector<1x8x128xf32>
    tpu.vector_store %arg12[%c2, %c0_57, %c0_58], %203 {strides = array<i32>} : memref<7x8x128xf32, #tpu.memory_space<vmem>>, vector<1x8x128xf32>,
    %cst_59 = arith.constant dense<0xFF800000> : vector<8xf32>
    %204 = vector.multi_reduction <maximumf>, %200, %cst_59 [1] : vector<8x128xf32> to vector<8xf32>
    %205 = vector.shape_cast %204 : vector<8xf32> to vector<8x1xf32>
    %206 = vector.broadcast %205 : vector<8x1xf32> to vector<8x128xf32>
    %207 = arith.cmpf oeq, %200, %206 : vector<8x128xf32>
    %c128_i32_60 = arith.constant 128 : i32
    %208 = vector.broadcast %c128_i32_60 : i32 to vector<8x128xi32>
    %209 = arith.select %207, %134, %208 : vector<8x128xi1>, vector<8x128xi32>
    %cst_61 = arith.constant dense<2147483647> : vector<8xi32>
    %210 = vector.multi_reduction <minsi>, %209, %cst_61 [1] : vector<8x128xi32> to vector<8xi32>
    %211 = vector.shape_cast %210 : vector<8xi32> to vector<8x1xi32>
    %c2_62 = arith.constant 2 : index
    %212 = memref.load %arg11[%c2_62] : memref<7xi32, #tpu.memory_space<smem>>
    %c0_i32_63 = arith.constant 0 : i32
    %213 = arith.cmpi sgt, %212, %c0_i32_63 : i32
    %c2_64 = arith.constant 2 : index
    %c0_65 = arith.constant 0 : index
    %c0_66 = arith.constant 0 : index
    %214 = vector.load %arg10[%c2_64, %c0_65, %c0_66] : memref<7x8x1xi32, #tpu.memory_space<vmem>>, vector<1x8x1xi32>
    %215 = vector.shape_cast %214 : vector<1x8x1xi32> to vector<8x1xi32>
    %216 = arith.select %213, %215, %211 : vector<8x1xi32>
    %217 = vector.broadcast %216 : vector<8x1xi32> to vector<8x128xi32>
    %218 = arith.cmpi eq, %134, %217 : vector<8x128xi32>
    %219 = arith.extui %218 : vector<8x128xi1> to vector<8x128xi32>
    %220 = arith.sitofp %219 : vector<8x128xi32> to vector<8x128xf32>
    %cst_67 = arith.constant dense<0.000000e+00> : vector<8x128xf32>
    %221 = tpu.matmul %220, %19, %cst_67 {dimension_numbers = #tpu.dot_dimension_numbers<[1], [0], [0], [1], [0, 0, 1, 1], [], []>} : vector<8x128xf32>, vector<128x128xf32>, vector<8x128xf32> -> vector<8x128xf32>
    %cst_68 = arith.constant dense<0.000000e+00> : vector<8x128xf32>
    %222 = tpu.matmul %198, %1, %cst_68 {dimension_numbers = #tpu.dot_dimension_numbers<[1], [0], [0], [1], [0, 0, 1, 1], [], []>} : vector<8x32xf32>, vector<32x128xf32>, vector<8x128xf32> -> vector<8x128xf32>
    %223 = arith.addf %221, %222 : vector<8x128xf32>
    %224 = arith.negf %223 : vector<8x128xf32>
    %225 = math.exp %224 : vector<8x128xf32>
    %cst_69 = arith.constant 1.000000e+00 : f32
    %226 = vector.broadcast %cst_69 : f32 to vector<8x128xf32>
    %227 = arith.addf %226, %225 : vector<8x128xf32>
    %228 = arith.divf %226, %227 : vector<8x128xf32>
    %229 = math.tanh %223 : vector<8x128xf32>
    %230 = vector.extract_strided_slice %228 {offsets = [0, 0], sizes = [8, 32], strides = [1, 1]} : vector<8x128xf32> to vector<8x32xf32>
    %231 = vector.extract_strided_slice %228 {offsets = [0, 32], sizes = [8, 32], strides = [1, 1]} : vector<8x128xf32> to vector<8x32xf32>
    %232 = vector.extract_strided_slice %229 {offsets = [0, 64], sizes = [8, 32], strides = [1, 1]} : vector<8x128xf32> to vector<8x32xf32>
    %233 = vector.extract_strided_slice %228 {offsets = [0, 96], sizes = [8, 32], strides = [1, 1]} : vector<8x128xf32> to vector<8x32xf32>
    %234 = arith.mulf %231, %196 : vector<8x32xf32>
    %235 = arith.mulf %230, %232 : vector<8x32xf32>
    %236 = arith.addf %234, %235 : vector<8x32xf32>
    %237 = math.tanh %236 : vector<8x32xf32>
    %238 = arith.mulf %233, %237 : vector<8x32xf32>
    %cst_70 = arith.constant dense<0.000000e+00> : vector<8x128xf32>
    %239 = tpu.matmul %238, %2, %cst_70 {dimension_numbers = #tpu.dot_dimension_numbers<[1], [0], [0], [1], [0, 0, 1, 1], [], []>} : vector<8x32xf32>, vector<32x128xf32>, vector<8x128xf32> -> vector<8x128xf32>
    %240 = arith.addf %239, %5 : vector<8x128xf32>
    %c3 = arith.constant 3 : index
    %c0_71 = arith.constant 0 : index
    %c0_72 = arith.constant 0 : index
    %241 = vector.load %arg12[%c3, %c0_71, %c0_72] : memref<7x8x128xf32, #tpu.memory_space<vmem>>, vector<1x8x128xf32>
    %242 = vector.shape_cast %241 : vector<1x8x128xf32> to vector<8x128xf32>
    %243 = vector.shape_cast %240 : vector<8x128xf32> to vector<1x8x128xf32>
    tpu.vector_store %arg12[%c3, %c0_71, %c0_72], %243 {strides = array<i32>} : memref<7x8x128xf32, #tpu.memory_space<vmem>>, vector<1x8x128xf32>,
    %cst_73 = arith.constant dense<0xFF800000> : vector<8xf32>
    %244 = vector.multi_reduction <maximumf>, %240, %cst_73 [1] : vector<8x128xf32> to vector<8xf32>
    %245 = vector.shape_cast %244 : vector<8xf32> to vector<8x1xf32>
    %246 = vector.broadcast %245 : vector<8x1xf32> to vector<8x128xf32>
    %247 = arith.cmpf oeq, %240, %246 : vector<8x128xf32>
    %c128_i32_74 = arith.constant 128 : i32
    %248 = vector.broadcast %c128_i32_74 : i32 to vector<8x128xi32>
    %249 = arith.select %247, %134, %248 : vector<8x128xi1>, vector<8x128xi32>
    %cst_75 = arith.constant dense<2147483647> : vector<8xi32>
    %250 = vector.multi_reduction <minsi>, %249, %cst_75 [1] : vector<8x128xi32> to vector<8xi32>
    %251 = vector.shape_cast %250 : vector<8xi32> to vector<8x1xi32>
    %c3_76 = arith.constant 3 : index
    %252 = memref.load %arg11[%c3_76] : memref<7xi32, #tpu.memory_space<smem>>
    %c0_i32_77 = arith.constant 0 : i32
    %253 = arith.cmpi sgt, %252, %c0_i32_77 : i32
    %c3_78 = arith.constant 3 : index
    %c0_79 = arith.constant 0 : index
    %c0_80 = arith.constant 0 : index
    %254 = vector.load %arg10[%c3_78, %c0_79, %c0_80] : memref<7x8x1xi32, #tpu.memory_space<vmem>>, vector<1x8x1xi32>
    %255 = vector.shape_cast %254 : vector<1x8x1xi32> to vector<8x1xi32>
    %256 = arith.select %253, %255, %251 : vector<8x1xi32>
    %257 = vector.broadcast %256 : vector<8x1xi32> to vector<8x128xi32>
    %258 = arith.cmpi eq, %134, %257 : vector<8x128xi32>
    %259 = arith.extui %258 : vector<8x128xi1> to vector<8x128xi32>
    %260 = arith.sitofp %259 : vector<8x128xi32> to vector<8x128xf32>
    %cst_81 = arith.constant dense<0.000000e+00> : vector<8x128xf32>
    %261 = tpu.matmul %260, %19, %cst_81 {dimension_numbers = #tpu.dot_dimension_numbers<[1], [0], [0], [1], [0, 0, 1, 1], [], []>} : vector<8x128xf32>, vector<128x128xf32>, vector<8x128xf32> -> vector<8x128xf32>
    %cst_82 = arith.constant dense<0.000000e+00> : vector<8x128xf32>
    %262 = tpu.matmul %238, %1, %cst_82 {dimension_numbers = #tpu.dot_dimension_numbers<[1], [0], [0], [1], [0, 0, 1, 1], [], []>} : vector<8x32xf32>, vector<32x128xf32>, vector<8x128xf32> -> vector<8x128xf32>
    %263 = arith.addf %261, %262 : vector<8x128xf32>
    %264 = arith.negf %263 : vector<8x128xf32>
    %265 = math.exp %264 : vector<8x128xf32>
    %cst_83 = arith.constant 1.000000e+00 : f32
    %266 = vector.broadcast %cst_83 : f32 to vector<8x128xf32>
    %267 = arith.addf %266, %265 : vector<8x128xf32>
    %268 = arith.divf %266, %267 : vector<8x128xf32>
    %269 = math.tanh %263 : vector<8x128xf32>
    %270 = vector.extract_strided_slice %268 {offsets = [0, 0], sizes = [8, 32], strides = [1, 1]} : vector<8x128xf32> to vector<8x32xf32>
    %271 = vector.extract_strided_slice %268 {offsets = [0, 32], sizes = [8, 32], strides = [1, 1]} : vector<8x128xf32> to vector<8x32xf32>
    %272 = vector.extract_strided_slice %269 {offsets = [0, 64], sizes = [8, 32], strides = [1, 1]} : vector<8x128xf32> to vector<8x32xf32>
    %273 = vector.extract_strided_slice %268 {offsets = [0, 96], sizes = [8, 32], strides = [1, 1]} : vector<8x128xf32> to vector<8x32xf32>
    %274 = arith.mulf %271, %236 : vector<8x32xf32>
    %275 = arith.mulf %270, %272 : vector<8x32xf32>
    %276 = arith.addf %274, %275 : vector<8x32xf32>
    %277 = math.tanh %276 : vector<8x32xf32>
    %278 = arith.mulf %273, %277 : vector<8x32xf32>
    %cst_84 = arith.constant dense<0.000000e+00> : vector<8x128xf32>
    %279 = tpu.matmul %278, %2, %cst_84 {dimension_numbers = #tpu.dot_dimension_numbers<[1], [0], [0], [1], [0, 0, 1, 1], [], []>} : vector<8x32xf32>, vector<32x128xf32>, vector<8x128xf32> -> vector<8x128xf32>
    %280 = arith.addf %279, %5 : vector<8x128xf32>
    %c4 = arith.constant 4 : index
    %c0_85 = arith.constant 0 : index
    %c0_86 = arith.constant 0 : index
    %281 = vector.load %arg12[%c4, %c0_85, %c0_86] : memref<7x8x128xf32, #tpu.memory_space<vmem>>, vector<1x8x128xf32>
    %282 = vector.shape_cast %281 : vector<1x8x128xf32> to vector<8x128xf32>
    %283 = vector.shape_cast %280 : vector<8x128xf32> to vector<1x8x128xf32>
    tpu.vector_store %arg12[%c4, %c0_85, %c0_86], %283 {strides = array<i32>} : memref<7x8x128xf32, #tpu.memory_space<vmem>>, vector<1x8x128xf32>,
    %cst_87 = arith.constant dense<0xFF800000> : vector<8xf32>
    %284 = vector.multi_reduction <maximumf>, %280, %cst_87 [1] : vector<8x128xf32> to vector<8xf32>
    %285 = vector.shape_cast %284 : vector<8xf32> to vector<8x1xf32>
    %286 = vector.broadcast %285 : vector<8x1xf32> to vector<8x128xf32>
    %287 = arith.cmpf oeq, %280, %286 : vector<8x128xf32>
    %c128_i32_88 = arith.constant 128 : i32
    %288 = vector.broadcast %c128_i32_88 : i32 to vector<8x128xi32>
    %289 = arith.select %287, %134, %288 : vector<8x128xi1>, vector<8x128xi32>
    %cst_89 = arith.constant dense<2147483647> : vector<8xi32>
    %290 = vector.multi_reduction <minsi>, %289, %cst_89 [1] : vector<8x128xi32> to vector<8xi32>
    %291 = vector.shape_cast %290 : vector<8xi32> to vector<8x1xi32>
    %c4_90 = arith.constant 4 : index
    %292 = memref.load %arg11[%c4_90] : memref<7xi32, #tpu.memory_space<smem>>
    %c0_i32_91 = arith.constant 0 : i32
    %293 = arith.cmpi sgt, %292, %c0_i32_91 : i32
    %c4_92 = arith.constant 4 : index
    %c0_93 = arith.constant 0 : index
    %c0_94 = arith.constant 0 : index
    %294 = vector.load %arg10[%c4_92, %c0_93, %c0_94] : memref<7x8x1xi32, #tpu.memory_space<vmem>>, vector<1x8x1xi32>
    %295 = vector.shape_cast %294 : vector<1x8x1xi32> to vector<8x1xi32>
    %296 = arith.select %293, %295, %291 : vector<8x1xi32>
    %297 = vector.broadcast %296 : vector<8x1xi32> to vector<8x128xi32>
    %298 = arith.cmpi eq, %134, %297 : vector<8x128xi32>
    %299 = arith.extui %298 : vector<8x128xi1> to vector<8x128xi32>
    %300 = arith.sitofp %299 : vector<8x128xi32> to vector<8x128xf32>
    %cst_95 = arith.constant dense<0.000000e+00> : vector<8x128xf32>
    %301 = tpu.matmul %300, %19, %cst_95 {dimension_numbers = #tpu.dot_dimension_numbers<[1], [0], [0], [1], [0, 0, 1, 1], [], []>} : vector<8x128xf32>, vector<128x128xf32>, vector<8x128xf32> -> vector<8x128xf32>
    %cst_96 = arith.constant dense<0.000000e+00> : vector<8x128xf32>
    %302 = tpu.matmul %278, %1, %cst_96 {dimension_numbers = #tpu.dot_dimension_numbers<[1], [0], [0], [1], [0, 0, 1, 1], [], []>} : vector<8x32xf32>, vector<32x128xf32>, vector<8x128xf32> -> vector<8x128xf32>
    %303 = arith.addf %301, %302 : vector<8x128xf32>
    %304 = arith.negf %303 : vector<8x128xf32>
    %305 = math.exp %304 : vector<8x128xf32>
    %cst_97 = arith.constant 1.000000e+00 : f32
    %306 = vector.broadcast %cst_97 : f32 to vector<8x128xf32>
    %307 = arith.addf %306, %305 : vector<8x128xf32>
    %308 = arith.divf %306, %307 : vector<8x128xf32>
    %309 = math.tanh %303 : vector<8x128xf32>
    %310 = vector.extract_strided_slice %308 {offsets = [0, 0], sizes = [8, 32], strides = [1, 1]} : vector<8x128xf32> to vector<8x32xf32>
    %311 = vector.extract_strided_slice %308 {offsets = [0, 32], sizes = [8, 32], strides = [1, 1]} : vector<8x128xf32> to vector<8x32xf32>
    %312 = vector.extract_strided_slice %309 {offsets = [0, 64], sizes = [8, 32], strides = [1, 1]} : vector<8x128xf32> to vector<8x32xf32>
    %313 = vector.extract_strided_slice %308 {offsets = [0, 96], sizes = [8, 32], strides = [1, 1]} : vector<8x128xf32> to vector<8x32xf32>
    %314 = arith.mulf %311, %276 : vector<8x32xf32>
    %315 = arith.mulf %310, %312 : vector<8x32xf32>
    %316 = arith.addf %314, %315 : vector<8x32xf32>
    %317 = math.tanh %316 : vector<8x32xf32>
    %318 = arith.mulf %313, %317 : vector<8x32xf32>
    %cst_98 = arith.constant dense<0.000000e+00> : vector<8x128xf32>
    %319 = tpu.matmul %318, %2, %cst_98 {dimension_numbers = #tpu.dot_dimension_numbers<[1], [0], [0], [1], [0, 0, 1, 1], [], []>} : vector<8x32xf32>, vector<32x128xf32>, vector<8x128xf32> -> vector<8x128xf32>
    %320 = arith.addf %319, %5 : vector<8x128xf32>
    %c5 = arith.constant 5 : index
    %c0_99 = arith.constant 0 : index
    %c0_100 = arith.constant 0 : index
    %321 = vector.load %arg12[%c5, %c0_99, %c0_100] : memref<7x8x128xf32, #tpu.memory_space<vmem>>, vector<1x8x128xf32>
    %322 = vector.shape_cast %321 : vector<1x8x128xf32> to vector<8x128xf32>
    %323 = vector.shape_cast %320 : vector<8x128xf32> to vector<1x8x128xf32>
    tpu.vector_store %arg12[%c5, %c0_99, %c0_100], %323 {strides = array<i32>} : memref<7x8x128xf32, #tpu.memory_space<vmem>>, vector<1x8x128xf32>,
    %cst_101 = arith.constant dense<0xFF800000> : vector<8xf32>
    %324 = vector.multi_reduction <maximumf>, %320, %cst_101 [1] : vector<8x128xf32> to vector<8xf32>
    %325 = vector.shape_cast %324 : vector<8xf32> to vector<8x1xf32>
    %326 = vector.broadcast %325 : vector<8x1xf32> to vector<8x128xf32>
    %327 = arith.cmpf oeq, %320, %326 : vector<8x128xf32>
    %c128_i32_102 = arith.constant 128 : i32
    %328 = vector.broadcast %c128_i32_102 : i32 to vector<8x128xi32>
    %329 = arith.select %327, %134, %328 : vector<8x128xi1>, vector<8x128xi32>
    %cst_103 = arith.constant dense<2147483647> : vector<8xi32>
    %330 = vector.multi_reduction <minsi>, %329, %cst_103 [1] : vector<8x128xi32> to vector<8xi32>
    %331 = vector.shape_cast %330 : vector<8xi32> to vector<8x1xi32>
    %c5_104 = arith.constant 5 : index
    %332 = memref.load %arg11[%c5_104] : memref<7xi32, #tpu.memory_space<smem>>
    %c0_i32_105 = arith.constant 0 : i32
    %333 = arith.cmpi sgt, %332, %c0_i32_105 : i32
    %c5_106 = arith.constant 5 : index
    %c0_107 = arith.constant 0 : index
    %c0_108 = arith.constant 0 : index
    %334 = vector.load %arg10[%c5_106, %c0_107, %c0_108] : memref<7x8x1xi32, #tpu.memory_space<vmem>>, vector<1x8x1xi32>
    %335 = vector.shape_cast %334 : vector<1x8x1xi32> to vector<8x1xi32>
    %336 = arith.select %333, %335, %331 : vector<8x1xi32>
    %337 = vector.broadcast %336 : vector<8x1xi32> to vector<8x128xi32>
    %338 = arith.cmpi eq, %134, %337 : vector<8x128xi32>
    %339 = arith.extui %338 : vector<8x128xi1> to vector<8x128xi32>
    %340 = arith.sitofp %339 : vector<8x128xi32> to vector<8x128xf32>
    %cst_109 = arith.constant dense<0.000000e+00> : vector<8x128xf32>
    %341 = tpu.matmul %340, %19, %cst_109 {dimension_numbers = #tpu.dot_dimension_numbers<[1], [0], [0], [1], [0, 0, 1, 1], [], []>} : vector<8x128xf32>, vector<128x128xf32>, vector<8x128xf32> -> vector<8x128xf32>
    %cst_110 = arith.constant dense<0.000000e+00> : vector<8x128xf32>
    %342 = tpu.matmul %318, %1, %cst_110 {dimension_numbers = #tpu.dot_dimension_numbers<[1], [0], [0], [1], [0, 0, 1, 1], [], []>} : vector<8x32xf32>, vector<32x128xf32>, vector<8x128xf32> -> vector<8x128xf32>
    %343 = arith.addf %341, %342 : vector<8x128xf32>
    %344 = arith.negf %343 : vector<8x128xf32>
    %345 = math.exp %344 : vector<8x128xf32>
    %cst_111 = arith.constant 1.000000e+00 : f32
    %346 = vector.broadcast %cst_111 : f32 to vector<8x128xf32>
    %347 = arith.addf %346, %345 : vector<8x128xf32>
    %348 = arith.divf %346, %347 : vector<8x128xf32>
    %349 = math.tanh %343 : vector<8x128xf32>
    %350 = vector.extract_strided_slice %348 {offsets = [0, 0], sizes = [8, 32], strides = [1, 1]} : vector<8x128xf32> to vector<8x32xf32>
    %351 = vector.extract_strided_slice %348 {offsets = [0, 32], sizes = [8, 32], strides = [1, 1]} : vector<8x128xf32> to vector<8x32xf32>
    %352 = vector.extract_strided_slice %349 {offsets = [0, 64], sizes = [8, 32], strides = [1, 1]} : vector<8x128xf32> to vector<8x32xf32>
    %353 = vector.extract_strided_slice %348 {offsets = [0, 96], sizes = [8, 32], strides = [1, 1]} : vector<8x128xf32> to vector<8x32xf32>
    %354 = arith.mulf %351, %316 : vector<8x32xf32>
    %355 = arith.mulf %350, %352 : vector<8x32xf32>
    %356 = arith.addf %354, %355 : vector<8x32xf32>
    %357 = math.tanh %356 : vector<8x32xf32>
    %358 = arith.mulf %353, %357 : vector<8x32xf32>
    %cst_112 = arith.constant dense<0.000000e+00> : vector<8x128xf32>
    %359 = tpu.matmul %358, %2, %cst_112 {dimension_numbers = #tpu.dot_dimension_numbers<[1], [0], [0], [1], [0, 0, 1, 1], [], []>} : vector<8x32xf32>, vector<32x128xf32>, vector<8x128xf32> -> vector<8x128xf32>
    %360 = arith.addf %359, %5 : vector<8x128xf32>
    %c6 = arith.constant 6 : index
    %c0_113 = arith.constant 0 : index
    %c0_114 = arith.constant 0 : index
    %361 = vector.load %arg12[%c6, %c0_113, %c0_114] : memref<7x8x128xf32, #tpu.memory_space<vmem>>, vector<1x8x128xf32>
    %362 = vector.shape_cast %361 : vector<1x8x128xf32> to vector<8x128xf32>
    %363 = vector.shape_cast %360 : vector<8x128xf32> to vector<1x8x128xf32>
    tpu.vector_store %arg12[%c6, %c0_113, %c0_114], %363 {strides = array<i32>} : memref<7x8x128xf32, #tpu.memory_space<vmem>>, vector<1x8x128xf32>,
    return
  }
}

</mosaic_0001>

<bundles_post_ra>
// kernel: tpu_custom_call.1
= control target key start
LH: loop header
LB: loop body
LE: loop exit
PB: predicated region body
PF: predicated region fallthrough
CT: control target
= control target key end

     0   :  { %17 = vsyncpa [#allocation4], 0  ;;  %s4450_s0 = inlined_call_operand.vmem [shape: f32[48,16], index: 0, kind: input, shape index: {}]   ;;  %s4451_s1 = inlined_call_operand.vmem [shape: f32[16,128], index: 1, kind: input, shape index: {}]   ;;  %s4452_s2 = inlined_call_operand.vmem [shape: f32[32,128], index: 2, kind: input, shape index: {}]   ;;  %s4453_s3 = inlined_call_operand.vmem [shape: f32[1,128], index: 3, kind: input, shape index: {}]   ;;  %s4454_s4 = inlined_call_operand.vmem [shape: f32[128,16], index: 4, kind: input, shape index: {}]   ;;  %s4455_s5 = inlined_call_operand.vmem [shape: f32[16,128], index: 5, kind: input, shape index: {}]   ;;  %s4456_s6 = inlined_call_operand.vmem [shape: f32[32,128], index: 6, kind: input, shape index: {}]   ;;  %s4457_s7 = inlined_call_operand.vmem [shape: f32[1,128], index: 7, kind: input, shape index: {}]   ;;  %s4458_s8 = inlined_call_operand.vmem [shape: f32[32,128], index: 8, kind: input, shape index: {}]   ;;  %s4459_s9 = inlined_call_operand.vmem [shape: f32[1,128], index: 9, kind: input, shape index: {}]   ;;  %s4460_s10 = inlined_call_operand.vmem [shape: s32[7,8,1], index: 10, kind: input, shape index: {}]   ;;  %s4461_s11 = inlined_call_operand.vmem [shape: s32[7], index: 11, kind: input, shape index: {}]   ;;  %s4462_s12 = inlined_call_operand.hbm [shape: f32[7,8,128], index: 12, kind: output, shape index: {}]  }
   0x1   :  { %18 = vsyncpa [#allocation3], 0  ;;  %s47_s23 = sshll.u32 %s4461_s11, 4  ;;  %s48_s23 = int_to_ptr.vmem [resolvable:$true] %s47_s23 }
   0x2   :  { %s3782_s24 = scalar_lea.vmem %s48_s23, 16  ;;  %p3787_p1 = scmp.lt.s32.totalorder %s48_s23, %s48_s23 }
   0x3   :  { %p3783_p0 = scmp.ne.s32.totalorder %s48_s23, %s3782_s24  ;;  %p3788_p2 = scmp.lt.s32.totalorder %s3782_s24, %s3782_s24 }
   0x5   :  { %p3789_p3 = por %p3788_p2, %p3787_p1 }
   0x7   :  { %p3790_p4 = pnand %p3789_p3, %p3783_p0 }
   0x9   :  { %3793 = shalt.err (!%p3790_p4)
}
   0xa   :  { %s3820_s25 = smov [#allocation2]  }
   0xb   :  { %50 = dma.vmem_to_smem %s48_s23, 16, %s3820_s25, [#allocation4]  }
   0xc   :  { %3816 = dma.done.wait [#allocation4], 16  }
   0xd   :  { %3817 = vsyncadd [#allocation4], 4294967280 }
   0xe   :  { %54 = sfence }
   0xf   :  { %v80_v0 = vld [vmem:[%s4451_s1] sm:$0xff]  ;;  %v81_v1 = vld [vmem:[%s4451_s1 + $0x8] sm:$0xff]  ;;  %vm89_vm0 = vcmask 130048   ;;  %v3821_v6 = vmov 0.0   ;;  %v3822_v9 = vmov 0.0|0.0   ;;  %v76_v10 = vld [vmem:[%s4450_s0 + $0x10] sm:$0xff] }
  0x10   :  { %v74_v2 = vld [vmem:[%s4450_s0] sm:$0xff]  ;;  %v3401_v3 = vpack.c.bf16 %v81_v1, %v80_v0  ;;  %v56_v5 = vld [vmem:[%s4452_s2 + $0x8] sm:$0xff]  ;;  %1020 = vst [vmem:[#allocation5] sm:$0xff] %v3821_v6  ;;  %v57_v11 = vld [vmem:[%s4452_s2 + $0x10] sm:$0xff]  ;;  %vm3823_vm1 = vmmov 0   ;;  %s3825_s11 = smov 32  }
  0x11   :  { %2956 = vmatprep.mubr.msk.f32.mxu0 %vm89_vm0, %v74_v2  ;;  %v55_v4 = vld [vmem:[%s4452_s2] sm:$0xff]  ;;  %v75_v7 = vld [vmem:[%s4450_s0 + $0x8] sm:$0xff]  ;;  %v58_v12 = vld [vmem:[%s4452_s2 + $0x18] sm:$0xff]  ;;  %vm421_vm2 = vcmask 261120   ;;  %s2706_s23 = sld [smem:[#allocation2 + $0x2]]  ;;  %s2720_s28 = sld [smem:[#allocation2 + $0x4]] }
  0x12   :  { %3402 = vmatprep.subr.bf16.mxu0 %v3401_v3  ;;  %v3919_v8 = vpack.c.bf16 %v56_v5, %v55_v4  ;;  %v77_v13 = vld [vmem:[%s4450_s0 + $0x18] sm:$0xff]  ;;  %v3937_v14 = vpack.c.bf16 %v58_v12, %v57_v11  ;;  %v78_v15 = vld [vmem:[%s4450_s0 + $0x20] sm:$0xff]  ;;  %v79_v16 = vld [vmem:[%s4450_s0 + $0x28] sm:$0xff]  ;;  %s2727_s13 = sld [smem:[#allocation2 + $0x5]] }
  0x13   :  { %3404 = vmatpush3.bf16.msra.mxu0 %v3401_v3  ;;  %v2659_v17 = vld [vmem:[%s4453_s3] ss:$0 sm:$0xff]  ;;  %s3824_s3 = smov 64  }
  0x14   :  { %3409 = vmatprep.subr.bf16.mxu0 %v3822_v9 }
  0x16   :  { %2957 = vmatmul.mubr.msk.f32.vlgmr.msra.gmra.mrb[0].mxu0 %vm89_vm0, %v75_v7 }
  0x17   :  { %3411 = vmatpush3.bf16.msra.mxu0 %v3919_v8  ;;  %2959 = vmatprep.mubr.msk.f32.mxu0 %vm89_vm0, %v76_v10  ;;  %p1568_p6 = scmp.gt.s32.totalorder %s2706_s23, 0  ;;  %p2114_p8 = scmp.gt.s32.totalorder %s2720_s28, 0 }
  0x18   :  { %3412 = vmatprep.subr.bf16.mxu0 %v3822_v9  ;;  %p2387_p9 = scmp.gt.s32.totalorder %s2727_s13, 0 }
  0x19   :  { %s1571_s24 = scalar_select %p1568_p6, 1, 0 }
  0x1a   :  { %2960 = vmatmul.mubr.msk.f32.gmra.mrb[2].mxu0 %vm89_vm0, %v77_v13  ;;  %s2117_s0 = scalar_select %p2114_p8, 1, 0 }
  0x1b   :  { %2962 = vmatprep.mubr.msk.f32.mxu0 %vm89_vm0, %v78_v15  ;;  %3414 = vmatpush3.bf16.msra.mxu0 %v3937_v14 }
  0x1c   :  { %3415 = vmatprep.subr.bf16.mxu0 %v3822_v9 }
  0x1e   :  { %2963 = vmatmul.mubr.msk.f32.gmra.mrb[4].mxu0 %vm89_vm0, %v79_v16 }
  0x1f   :  { %3001 = vmatprep.mubr.msk.f32.mxu0 %vm3823_vm1, %v3821_v6 }
  0x22   :  { %3002 = vmatmul.mubr.f32.vlgmr.msra.gmra.mrb[6].mxu0 %v3821_v6 }
  0x23   :  { %3417 = vmatpush3.bf16.msra.mxu0 %v3919_v8  ;;  %3012 = vmatprep.mubr.msk.f32.mxu0 %vm3823_vm1, %v3821_v6 }
  0x24   :  { %3418 = vmatprep.subr.bf16.mxu0 %v3822_v9 }
  0x27   :  { %3420 = vmatpush3.bf16.msra.mxu0 %v3937_v14 }
  0x28   :  { %3421 = vmatprep.subr.bf16.mxu0 %v3822_v9 }
  0xe9   :  { %v2958_v18 = vpop.f32.mrb[0].mxu0 }
  0xea   :  { %v180_v19 = vadd.f32 %v2958_v18, %v2659_v17  ;;  %v174_v20 = vpop.f32.mrb[1].mxu0  ;;  %v220_v18 = vld [vmem:[%s4455_s5 + $0x8] sm:$0xff] }
  0xeb   :  { %v175_v29 = vadd.f32 %v2659_v17, %v174_v20 }
  0xed   :  { %v2961_v21 = vpop.f32.mrb[2].mxu0 }
  0xee   :  { %v3963_v22 = vadd.f32 %v2961_v21, %v2659_v17  ;;  %v184_v23 = vpop.f32.mrb[3].mxu0  ;;  %v204_v21 = vld [vmem:[%s4454_s4 + $0x8] sm:$0xff] }
  0xef   :  { %v3965_v24 = vadd.f32 %v2659_v17, %v184_v23  ;;  %v205_v23 = vld [vmem:[%s4454_s4 + $0x10] sm:$0xff] }
  0xf1   :  { %v2964_v25 = vpop.f32.mrb[4].mxu0 }
  0xf2   :  { %v3967_v26 = vadd.f32 %v2964_v25, %v2659_v17  ;;  %v194_v27 = vpop.f32.mrb[5].mxu0  ;;  %v207_v25 = vld [vmem:[%s4454_s4 + $0x20] sm:$0xff] }
  0xf3   :  { %v3969_v28 = vadd.f32 %v2659_v17, %v194_v27  ;;  %v219_v17 = vld [vmem:[%s4455_s5] sm:$0xff] }
  0xf4   :  { %v3405_v20 = vpack.c.bf16 %v220_v18, %v219_v17 }
  0xf5   :  { %v491_v30 = vpop.f32.mrb[6].mxu0 }
  0xf6   :  { %v495_v31 = vadd.f32 %v491_v30, %v175_v29  ;;  %v3003_v32 = vpop.f32.mrb[7].mxu0  ;;  %3406 = vmatprep.subr.bf16.mxu1 %v3405_v20  ;;  %v208_v29 = vld [vmem:[%s4454_s4 + $0x28] sm:$0xff]  ;;  %v209_v30 = vld [vmem:[%s4454_s4 + $0x30] sm:$0xff] }
  0xf7   :  { %3408 = vmatpush3.bf16.msra.mxu1 %v3405_v20  ;;  %v211_v32 = vld [vmem:[%s4454_s4 + $0x40] sm:$0xff] }
  0xf8   :  { %3685 = vtanh.f32 %v495_v31  ;;  %v2683_v34 = vmul.f32 -1.442695, %v495_v31  ;;  %3427 = vmatprep.subr.bf16.mxu1 %v3822_v9  ;;  %v210_v31 = vld [vmem:[%s4454_s4 + $0x38] sm:$0xff] }
  0xfa   :  { %3687 = vpow2.f32 %v2683_v34  ;;  %v213_v34 = vld [vmem:[%s4454_s4 + $0x50] sm:$0xff] }
 0x102   :  { %v3686_v33 = vpop.eup %3685 }
 0x103   :  { %505 = vrot.lane.b32.xlu0 %v3686_v33, %s3824_s3  ;;  %v212_v33 = vld [vmem:[%s4454_s4 + $0x48] sm:$0xff] }
 0x104   :  { %v3688_v35 = vpop.eup %3687 }
 0x105   :  { %v499_v36 = vadd.f32 1.0, %v3688_v35  ;;  %v214_v35 = vld [vmem:[%s4454_s4 + $0x58] sm:$0xff] }
 0x107   :  { %3689 = vrcp.f32 %v499_v36  ;;  %v215_v36 = vld [vmem:[%s4454_s4 + $0x60] sm:$0xff] }
 0x111   :  { %v3690_v37 = vpop.eup %3689 }
 0x112   :  { %v503_v40 = vmul.f32 0.0, %v3690_v37 }
 0x175   :  { %v506_v38 = vpop.permute.xlu0 %505 }
 0x176   :  { %v508_v39 = vmul.f32 %v3690_v37, %v506_v38  ;;  %v217_v38 = vld [vmem:[%s4454_s4 + $0x70] sm:$0xff] }
 0x178   :  { %510 = vrot.lane.b32.xlu0 %v508_v39, %s3825_s11  ;;  %v218_v39 = vld [vmem:[%s4454_s4 + $0x78] sm:$0xff] }
 0x1ea   :  { %v511_v41 = vpop.permute.xlu0 %510 }
 0x1eb   :  { %v513_v42 = vadd.f32 %v511_v41, %v503_v40 }
 0x1ed   :  { %3691 = vtanh.f32 %v513_v42 }
 0x1f7   :  { %v3692_v43 = vpop.eup %3691 }
 0x1f8   :  { %516 = vrot.lane.b32.xlu1 %v3692_v43, %s3824_s3 }
 0x26a   :  { %v517_v44 = vpop.permute.xlu1 %516 }
 0x26b   :  { %v519_v45 = vmul.f32 %v3690_v37, %v517_v44  ;;  %v216_v37 = vld [vmem:[%s4454_s4 + $0x68] sm:$0xff] }
 0x26d   :  { %521 = vrot.lane.b32.xlu1 %v519_v45, %s3825_s11 }
 0x2df   :  { %v522_v46 = vpop.permute.xlu1 %521 }
 0x2e0   :  { %3013 = vmatmul.mubr.msk.f32.vlgmr.msra.gmra.mrb[8].mxu0 %vm421_vm2, %v522_v46 }
 0x2e1   :  { %3423 = vmatpush3.bf16.msra.mxu0 %v3919_v8  ;;  %3023 = vmatprep.mubr.msk.f32.mxu0 %vm3823_vm1, %v3821_v6 }
 0x2e2   :  { %3424 = vmatprep.subr.bf16.mxu0 %v3822_v9 }
 0x2e5   :  { %3426 = vmatpush3.bf16.msra.mxu0 %v3937_v14 }
 0x2e6   :  { %3433 = vmatprep.subr.bf16.mxu0 %v3822_v9 }
 0x3b3   :  { %v591_v47 = vpop.f32.mrb[8].mxu0 }
 0x3b4   :  { %v595_v48 = vadd.f32 %v591_v47, %v180_v19  ;;  %v3014_v49 = vpop.f32.mrb[9].mxu0  ;;  %v203_v19 = vld [vmem:[%s4454_s4] sm:$0xff] }
 0x3b5   :  { %2969 = vmatprep.mubr.msk.f32.mxu1 %vm89_vm0, %v203_v19 }
 0x3b6   :  { %3693 = vtanh.f32 %v595_v48  ;;  %v2685_v51 = vmul.f32 -1.442695, %v595_v48  ;;  %2970 = vmatmul.mubr.msk.f32.vlgmr.msra.gmra.mrb[0].mxu1 %vm89_vm0, %v204_v21 }
 0x3b7   :  { %3429 = vmatpush3.bf16.msra.mxu1 %v3919_v8  ;;  %2972 = vmatprep.mubr.msk.f32.mxu1 %vm89_vm0, %v205_v23 }
 0x3b8   :  { %3695 = vpow2.f32 %v2685_v51  ;;  %3430 = vmatprep.subr.bf16.mxu1 %v3822_v9 }
 0x3bb   :  { %3432 = vmatpush3.bf16.msra.mxu1 %v3937_v14 }
 0x3bc   :  { %3439 = vmatprep.subr.bf16.mxu1 %v3822_v9 }
 0x3c0   :  { %v3694_v50 = vpop.eup %3693 }
 0x3c1   :  { %605 = vrot.lane.b32.xlu0 %v3694_v50, %s3824_s3 }
 0x3c2   :  { %v3696_v52 = vpop.eup %3695 }
 0x3c3   :  { %v599_v53 = vadd.f32 1.0, %v3696_v52 }
 0x3c5   :  { %3697 = vrcp.f32 %v599_v53 }
 0x3cf   :  { %v3698_v54 = vpop.eup %3697 }
 0x3d0   :  { %v603_v57 = vmul.f32 %v3698_v54, %v513_v42  ;;  %v2666_v42 = vld [vmem:[%s4457_s7] ss:$0 sm:$0xff]  ;;  %s2713_s7 = sld [smem:[#allocation2 + $0x3]] }
 0x3d6   :  { %p1841_p7 = scmp.gt.s32.totalorder %s2713_s7, 0 }
 0x3d8   :  { %s1844_s26 = scalar_select %p1841_p7, 1, 0 }
 0x433   :  { %v606_v55 = vpop.permute.xlu0 %605 }
 0x434   :  { %v608_v56 = vmul.f32 %v3698_v54, %v606_v55 }
 0x436   :  { %610 = vrot.lane.b32.xlu1 %v608_v56, %s3825_s11 }
 0x489   :  { %v2971_v43 = vpop.f32.mrb[0].mxu1 }
 0x48a   :  { %v348_v44 = vadd.f32 %v2971_v43, %v2666_v42  ;;  %v342_v45 = vpop.f32.mrb[1].mxu1 }
 0x48b   :  { %v343_v46 = vadd.f32 %v2666_v42, %v342_v45 }
 0x48d   :  { %v4081_v47 = vpack.c.bf16 %v348_v44, %v343_v46 }
 0x4a8   :  { %v611_v58 = vpop.permute.xlu1 %610 }
 0x4a9   :  { %v613_v59 = vadd.f32 %v611_v58, %v603_v57 }
 0x4ab   :  { %3699 = vtanh.f32 %v613_v59 }
 0x4b5   :  { %v3700_v60 = vpop.eup %3699 }
 0x4b6   :  { %616 = vrot.lane.b32.xlu0 %v3700_v60, %s3824_s3 }
 0x528   :  { %v617_v61 = vpop.permute.xlu0 %616 }
 0x529   :  { %v619_v62 = vmul.f32 %v3698_v54, %v617_v61 }
 0x52b   :  { %621 = vrot.lane.b32.xlu1 %v619_v62, %s3825_s11 }
 0x59d   :  { %v622_v63 = vpop.permute.xlu1 %621 }
 0x59e   :  { %3024 = vmatmul.mubr.msk.f32.vlgmr.msra.gmra.mrb[10].mxu0 %vm421_vm2, %v622_v63 }
 0x59f   :  { %3435 = vmatpush3.bf16.msra.mxu0 %v3919_v8  ;;  %3045 = vmatprep.mubr.msk.f32.mxu0 %vm3823_vm1, %v3821_v6 }
 0x5a0   :  { %3436 = vmatprep.subr.bf16.mxu0 %v3822_v9 }
 0x5a3   :  { %3438 = vmatpush3.bf16.msra.mxu0 %v3937_v14 }
 0x5a4   :  { %3445 = vmatprep.subr.bf16.mxu0 %v3822_v9 }
 0x671   :  { %v691_v0 = vpop.f32.mrb[10].mxu0 }
 0x672   :  { %v695_v1 = vadd.f32 %v691_v0, %v3965_v24  ;;  %v3025_v2 = vpop.f32.mrb[11].mxu0  ;;  %v206_v24 = vld [vmem:[%s4454_s4 + $0x18] sm:$0xff] }
 0x673   :  { %2973 = vmatmul.mubr.msk.f32.gmra.mrb[2].mxu1 %vm89_vm0, %v206_v24 }
 0x674   :  { %3701 = vtanh.f32 %v695_v1  ;;  %v2687_v4 = vmul.f32 -1.442695, %v695_v1  ;;  %2975 = vmatprep.mubr.msk.f32.mxu1 %vm89_vm0, %v207_v25 }
 0x676   :  { %3703 = vpow2.f32 %v2687_v4 }
 0x677   :  { %2976 = vmatmul.mubr.msk.f32.gmra.mrb[4].mxu1 %vm89_vm0, %v208_v29 }
 0x678   :  { %2978 = vmatprep.mubr.msk.f32.mxu1 %vm89_vm0, %v209_v30 }
 0x67b   :  { %2979 = vmatmul.mubr.msk.f32.gmra.mrb[6].mxu1 %vm89_vm0, %v210_v31 }
 0x67c   :  { %2981 = vmatprep.mubr.msk.f32.mxu1 %vm89_vm0, %v211_v32 }
 0x67e   :  { %v3702_v3 = vpop.eup %3701 }
 0x67f   :  { %705 = vrot.lane.b32.xlu0 %v3702_v3, %s3824_s3  ;;  %2982 = vmatmul.mubr.msk.f32.gmra.mrb[8].mxu1 %vm89_vm0, %v212_v33 }
 0x680   :  { %v3704_v5 = vpop.eup %3703  ;;  %2984 = vmatprep.mubr.msk.f32.mxu1 %vm89_vm0, %v213_v34 }
 0x681   :  { %v699_v7 = vadd.f32 1.0, %v3704_v5 }
 0x683   :  { %3705 = vrcp.f32 %v699_v7  ;;  %2985 = vmatmul.mubr.msk.f32.gmra.mrb[10].mxu1 %vm89_vm0, %v214_v35 }
 0x684   :  { %2987 = vmatprep.mubr.msk.f32.mxu1 %vm89_vm0, %v215_v36 }
 0x687   :  { %2988 = vmatmul.mubr.msk.f32.gmra.mrb[12].mxu1 %vm89_vm0, %v216_v37 }
 0x688   :  { %2990 = vmatprep.mubr.msk.f32.mxu1 %vm89_vm0, %v217_v38 }
 0x68b   :  { %2991 = vmatmul.mubr.msk.f32.gmra.mrb[14].mxu1 %vm89_vm0, %v218_v39 }
 0x68c   :  { %3034 = vmatprep.mubr.msk.f32.mxu1 %vm3823_vm1, %v3821_v6 }
 0x68d   :  { %v3706_v10 = vpop.eup %3705 }
 0x68e   :  { %v703_v13 = vmul.f32 %v3706_v10, %v613_v59 }
 0x6f1   :  { %v706_v11 = vpop.permute.xlu0 %705 }
 0x6f2   :  { %v708_v12 = vmul.f32 %v3706_v10, %v706_v11 }
 0x6f4   :  { %710 = vrot.lane.b32.xlu1 %v708_v12, %s3825_s11 }
 0x746   :  { %v2974_v48 = vpop.f32.mrb[2].mxu1 }
 0x747   :  { %v358_v49 = vadd.f32 %v2974_v48, %v2666_v42  ;;  %v352_v50 = vpop.f32.mrb[3].mxu1 }
 0x748   :  { %v353_v51 = vadd.f32 %v2666_v42, %v352_v50 }
 0x74a   :  { %v4083_v52 = vpack.c.bf16 %v358_v49, %v353_v51  ;;  %v2977_v53 = vpop.f32.mrb[4].mxu1 }
 0x74b   :  { %v368_v54 = vadd.f32 %v2977_v53, %v2666_v42  ;;  %v362_v55 = vpop.f32.mrb[5].mxu1 }
 0x74c   :  { %v363_v56 = vadd.f32 %v2666_v42, %v362_v55 }
 0x74e   :  { %v4085_v57 = vpack.c.bf16 %v368_v54, %v363_v56  ;;  %v2980_v58 = vpop.f32.mrb[6].mxu1 }
 0x74f   :  { %v378_v59 = vadd.f32 %v2980_v58, %v2666_v42  ;;  %v372_v60 = vpop.f32.mrb[7].mxu1 }
 0x750   :  { %v373_v61 = vadd.f32 %v2666_v42, %v372_v60 }
 0x752   :  { %v4087_v62 = vpack.c.bf16 %v378_v59, %v373_v61  ;;  %v2983_v63 = vpop.f32.mrb[8].mxu1 }
 0x753   :  { %v388_v0 = vadd.f32 %v2983_v63, %v2666_v42  ;;  %v382_v1 = vpop.f32.mrb[9].mxu1 }
 0x754   :  { %v383_v2 = vadd.f32 %v2666_v42, %v382_v1 }
 0x756   :  { %v4089_v3 = vpack.c.bf16 %v388_v0, %v383_v2  ;;  %v2986_v4 = vpop.f32.mrb[10].mxu1 }
 0x757   :  { %v398_v5 = vadd.f32 %v2986_v4, %v2666_v42  ;;  %v392_v7 = vpop.f32.mrb[11].mxu1 }
 0x766   :  { %v711_v15 = vpop.permute.xlu1 %710 }
 0x767   :  { %v3996_v16 = vadd.f32 %v711_v15, %v703_v13  ;;  %v2989_v13 = vpop.f32.mrb[12].mxu1 }
 0x768   :  { %v408_v15 = vadd.f32 %v2989_v13, %v2666_v42  ;;  %v402_v17 = vpop.f32.mrb[13].mxu1 }
 0x769   :  { %3707 = vtanh.f32 %v3996_v16  ;;  %v403_v18 = vadd.f32 %v2666_v42, %v402_v17  ;;  %v2992_v20 = vpop.f32.mrb[14].mxu1  ;;  %v60_v17 = vld [vmem:[%s4456_s6 + $0x8] sm:$0xff] }
 0x76a   :  { %v418_v21 = vadd.f32 %v2992_v20, %v2666_v42  ;;  %v412_v23 = vpop.f32.mrb[15].mxu1 }
 0x76b   :  { %v4098_v19 = vpack.c.bf16 %v408_v15, %v403_v18  ;;  %v413_v24 = vadd.f32 %v2666_v42, %v412_v23  ;;  %v3826_v18 = vmov 0   ;;  %v62_v23 = vld [vmem:[%s4456_s6 + $0x18] sm:$0xff] }
 0x76c   :  { %3684 = vset.pattern.permute.xlu0 %v3826_v18 }
 0x76d   :  { %v4102_v25 = vpack.c.bf16 %v418_v21, %v413_v24  ;;  %v61_v21 = vld [vmem:[%s4456_s6 + $0x10] sm:$0xff] }
 0x76e   :  { %v4139_v24 = vpack.c.bf16 %v62_v23, %v61_v21 }
 0x773   :  { %v3708_v27 = vpop.eup %3707 }
 0x774   :  { %716 = vrot.lane.b32.xlu0 %v3708_v27, %s3824_s3 }
 0x7e6   :  { %v717_v40 = vpop.permute.xlu0 %716 }
 0x7e7   :  { %v719_v41 = vmul.f32 %v3706_v10, %v717_v40  ;;  %v393_v10 = vadd.f32 %v2666_v42, %v392_v7 }
 0x7e9   :  { %721 = vrot.lane.b32.xlu1 %v719_v41, %s3825_s11  ;;  %v4091_v12 = vpack.c.bf16 %v398_v5, %v393_v10 }
 0x85b   :  { %v722_v11 = vpop.permute.xlu1 %721 }
 0x85c   :  { %3035 = vmatmul.mubr.msk.f32.vlgmr.msra.gmra.mrb[16].mxu1 %vm421_vm2, %v722_v11 }
 0x85d   :  { %3441 = vmatpush3.bf16.msra.mxu1 %v3919_v8  ;;  %3056 = vmatprep.mubr.msk.f32.mxu1 %vm3823_vm1, %v3821_v6 }
 0x85e   :  { %3442 = vmatprep.subr.bf16.mxu1 %v3822_v9 }
 0x861   :  { %3444 = vmatpush3.bf16.msra.mxu1 %v3937_v14 }
 0x862   :  { %3475 = vmatprep.subr.bf16.mxu1 %v3822_v9 }
 0x92f   :  { %v791_v27 = vpop.f32.mrb[16].mxu1 }
 0x930   :  { %v795_v8 = vadd.f32 %v791_v27, %v3963_v22  ;;  %v3036_v29 = vpop.f32.mrb[17].mxu1 }
 0x932   :  { %3709 = vtanh.f32 %v795_v8  ;;  %v2689_v31 = vmul.f32 -1.442695, %v795_v8  ;;  %v1023_v8 = vld [vmem:[%s4460_s10] sm:$0xff] }
 0x934   :  { %3711 = vpow2.f32 %v2689_v31 }
 0x93c   :  { %v3710_v30 = vpop.eup %3709 }
 0x93d   :  { %805 = vrot.lane.b32.xlu0 %v3710_v30, %s3824_s3 }
 0x93e   :  { %v3712_v32 = vpop.eup %3711 }
 0x93f   :  { %v799_v33 = vadd.f32 1.0, %v3712_v32  ;;  %v1021_v32 = vlaneseq }
 0x941   :  { %3713 = vrcp.f32 %v799_v33  ;;  %v4165_v33 = vand.u32 127, %v1021_v32 }
 0x94b   :  { %v3714_v34 = vpop.eup %3713 }
 0x94c   :  { %v803_v36 = vmul.f32 %v3714_v34, %v3996_v16 }
 0x9af   :  { %v806_v35 = vpop.permute.xlu0 %805 }
 0x9b0   :  { %v808_v14 = vmul.f32 %v3714_v34, %v806_v35  ;;  %v3827_v35 = vmov 1.0  }
 0x9b2   :  { %810 = vrot.lane.b32.xlu1 %v808_v14, %s3825_s11 }
 0xa24   :  { %v811_v37 = vpop.permute.xlu1 %810 }
 0xa25   :  { %v813_v38 = vadd.f32 %v811_v37, %v803_v36 }
 0xa27   :  { %3715 = vtanh.f32 %v813_v38 }
 0xa31   :  { %v3716_v22 = vpop.eup %3715 }
 0xa32   :  { %816 = vrot.lane.b32.xlu0 %v3716_v22, %s3824_s3 }
 0xaa4   :  { %v817_v39 = vpop.permute.xlu0 %816 }
 0xaa5   :  { %v819_v40 = vmul.f32 %v3714_v34, %v817_v39 }
 0xaa7   :  { %821 = vrot.lane.b32.xlu1 %v819_v40, %s3825_s11 }
 0xb19   :  { %v822_v41 = vpop.permute.xlu1 %821 }
 0xb1a   :  { %3046 = vmatmul.mubr.msk.f32.vlgmr.msra.gmra.mrb[12].mxu0 %vm421_vm2, %v822_v41 }
 0xb1b   :  { %3067 = vmatprep.mubr.msk.f32.mxu0 %vm3823_vm1, %v3821_v6 }
 0xbed   :  { %v891_v42 = vpop.f32.mrb[12].mxu0 }
 0xbee   :  { %v895_v43 = vadd.f32 %v891_v42, %v3969_v28  ;;  %v3047_v16 = vpop.f32.mrb[13].mxu0 }
 0xbf0   :  { %3717 = vtanh.f32 %v895_v43  ;;  %v2691_v45 = vmul.f32 -1.442695, %v895_v43 }
 0xbf2   :  { %3719 = vpow2.f32 %v2691_v45  ;;  %v63_v45 = vld [vmem:[%s4458_s8] sm:$0xff] }
 0xbfa   :  { %v3718_v44 = vpop.eup %3717 }
 0xbfb   :  { %905 = vrot.lane.b32.xlu0 %v3718_v44, %s3824_s3 }
 0xbfc   :  { %v3720_v46 = vpop.eup %3719 }
 0xbfd   :  { %v899_v48 = vadd.f32 1.0, %v3720_v46  ;;  %v64_v46 = vld [vmem:[%s4458_s8 + $0x8] sm:$0xff] }
 0xbff   :  { %3721 = vrcp.f32 %v899_v48  ;;  %v65_v48 = vld [vmem:[%s4458_s8 + $0x10] sm:$0xff] }
 0xc09   :  { %v3722_v49 = vpop.eup %3721 }
 0xc0a   :  { %v903_v53 = vmul.f32 %v3722_v49, %v813_v38 }
 0xc6d   :  { %v906_v50 = vpop.permute.xlu0 %905 }
 0xc6e   :  { %v908_v51 = vmul.f32 %v3722_v49, %v906_v50  ;;  %v66_v50 = vld [vmem:[%s4458_s8 + $0x18] sm:$0xff] }
 0xc70   :  { %910 = vrot.lane.b32.xlu1 %v908_v51, %s3825_s11  ;;  %v4194_v51 = vpack.c.bf16 %v66_v50, %v65_v48 }
 0xce2   :  { %v911_v54 = vpop.permute.xlu1 %910 }
 0xce3   :  { %v913_v55 = vadd.f32 %v911_v54, %v903_v53 }
 0xce5   :  { %3723 = vtanh.f32 %v913_v55 }
 0xcef   :  { %v3724_v28 = vpop.eup %3723 }
 0xcf0   :  { %916 = vrot.lane.b32.xlu0 %v3724_v28, %s3824_s3 }
 0xd62   :  { %v917_v56 = vpop.permute.xlu0 %916 }
 0xd63   :  { %v919_v58 = vmul.f32 %v3722_v49, %v917_v56  ;;  %v4188_v49 = vpack.c.bf16 %v64_v46, %v63_v45  ;;  %v4234_v56 = vld [vmem:[%s4459_s9] ss:$0 sm:$0xff]  ;;  %s2699_s9 = sld [smem:[#allocation2 + $0x1]] }
 0xd65   :  { %921 = vrot.lane.b32.xlu1 %v919_v58, %s3825_s11 }
 0xd69   :  { %p1295_p5 = scmp.gt.s32.totalorder %s2699_s9, 0 }
 0xd6b   :  { %s1298_s5 = scalar_select %p1295_p5, 1, 0 }
 0xdd7   :  { %v922_v59 = vpop.permute.xlu1 %921 }
 0xdd8   :  { %3057 = vmatmul.mubr.msk.f32.vlgmr.msra.gmra.mrb[18].mxu1 %vm421_vm2, %v922_v59 }
 0xdd9   :  { %3113 = vmatprep.mubr.msk.f32.mxu1 %vm3823_vm1, %v3821_v6  ;;  %3477 = vmatpush3.bf16.msra.mxu1 %v4188_v49 }
 0xdda   :  { %3478 = vmatprep.subr.bf16.mxu1 %v3822_v9 }
 0xddd   :  { %3480 = vmatpush3.bf16.msra.mxu1 %v4194_v51 }
 0xdde   :  { %3481 = vmatprep.subr.bf16.mxu1 %v3822_v9 }
 0xeab   :  { %v991_v60 = vpop.f32.mrb[18].mxu1 }
 0xeac   :  { %v995_v61 = vadd.f32 %v991_v60, %v3967_v26  ;;  %v3058_v63 = vpop.f32.mrb[19].mxu1  ;;  %v59_v26 = vld [vmem:[%s4456_s6] sm:$0xff]  ;;  %s2390_s6 = scalar_select %p2387_p9, 1, 0 }
 0xead   :  { %v4130_v20 = vpack.c.bf16 %v60_v17, %v59_v26  ;;  %v2700_v17 = vld [vmem:[%s4460_s10 + $0x8] sm:$0xff] }
 0xeae   :  { %3725 = vtanh.f32 %v995_v61  ;;  %v2693_v1 = vmul.f32 -1.442695, %v995_v61 }
 0xeaf   :  { %3447 = vmatpush3.bf16.msra.mxu0 %v4130_v20 }
 0xeb0   :  { %3727 = vpow2.f32 %v2693_v1  ;;  %3448 = vmatprep.subr.bf16.mxu0 %v3822_v9 }
 0xeb3   :  { %3450 = vmatpush3.bf16.msra.mxu0 %v4139_v24 }
 0xeb4   :  { %3451 = vmatprep.subr.bf16.mxu0 %v3822_v9 }
 0xeb8   :  { %v3726_v0 = vpop.eup %3725 }
 0xeb9   :  { %1005 = vrot.lane.b32.xlu0 %v3726_v0, %s3824_s3 }
 0xeba   :  { %v3728_v2 = vpop.eup %3727 }
 0xebb   :  { %v999_v4 = vadd.f32 1.0, %v3728_v2 }
 0xebd   :  { %3729 = vrcp.f32 %v999_v4 }
 0xec7   :  { %v3730_v5 = vpop.eup %3729 }
 0xec8   :  { %v1003_v11 = vmul.f32 %v3730_v5, %v913_v55 }
 0xf2b   :  { %v1006_v7 = vpop.permute.xlu0 %1005 }
 0xf2c   :  { %v1008_v10 = vmul.f32 %v3730_v5, %v1006_v7 }
 0xf2e   :  { %1010 = vrot.lane.b32.xlu1 %v1008_v10, %s3825_s11 }
 0xfa0   :  { %v1011_v13 = vpop.permute.xlu1 %1010 }
 0xfa1   :  { %v1013_v15 = vadd.f32 %v1011_v13, %v1003_v11  ;;  %v1299_v11 = vstv %s1298_s5 }
 0xfa2   :  { %vm1300_vm6 = vcmp.eq.s32.totalorder %v1299_v11, 1 }
 0xfa3   :  { %3731 = vtanh.f32 %v1013_v15 }
 0xfad   :  { %v3732_v27 = vpop.eup %3731 }
 0xfae   :  { %1016 = vrot.lane.b32.xlu0 %v3732_v27, %s3824_s3 }
 0xfb2   :  { %1025 = vperm.xlu0 %3684, %v1023_v8  }
0x1020   :  { %v1017_v29 = vpop.permute.xlu0 %1016 }
0x1021   :  { %v1019_v30 = vmul.f32 %v3730_v5, %v1017_v29 }
0x1023   :  { %1031 = vrot.lane.b32.xlu1 %v1019_v30, %s3825_s11 }
0x1031   :  { %v1026_v34 = vpop.permute.xlu0 %1025 }
0x1032   :  { %vm1027_vm3 = vcmp.eq.s32.totalorder %v4165_v33, %v1026_v34 }
0x1095   :  { %v1032_v31 = vpop.permute.xlu1 %1031 }
0x1096   :  { %3068 = vmatmul.mubr.msk.f32.vlgmr.msra.gmra.mrb[14].mxu0 %vm421_vm2, %v1032_v31 }
0x1097   :  { %3453 = vmatpush3.bf16.msra.mxu0 %v4081_v47  ;;  %3102 = vmatprep.mubr.msk.f32.mxu0 %vm3823_vm1, %v3821_v6 }
0x1098   :  { %3454 = vmatprep.subr.bf16.mxu0 %v3822_v9 }
0x109b   :  { %3456 = vmatpush3.bf16.msra.mxu0 %v4083_v52 }
0x109c   :  { %3457 = vmatprep.subr.bf16.mxu0 %v3822_v9 }
0x109f   :  { %3459 = vmatpush3.bf16.msra.mxu0 %v4085_v57 }
0x10a0   :  { %3460 = vmatprep.subr.bf16.mxu0 %v3822_v9 }
0x10a3   :  { %3462 = vmatpush3.bf16.msra.mxu0 %v4087_v62 }
0x10a4   :  { %3463 = vmatprep.subr.bf16.mxu0 %v3822_v9 }
0x10a7   :  { %3465 = vmatpush3.bf16.msra.mxu0 %v4089_v3 }
0x10a8   :  { %3466 = vmatprep.subr.bf16.mxu0 %v3822_v9 }
0x10ab   :  { %3468 = vmatpush3.bf16.msra.mxu0 %v4091_v12 }
0x10ac   :  { %3469 = vmatprep.subr.bf16.mxu0 %v3822_v9 }
0x10af   :  { %3471 = vmatpush3.bf16.msra.mxu0 %v4098_v19 }
0x10b0   :  { %3472 = vmatprep.subr.bf16.mxu0 %v3822_v9 }
0x10b3   :  { %3474 = vmatpush3.bf16.msra.mxu0 %v4102_v25 }
0x10b4   :  { %3511 = vmatprep.subr.bf16.mxu0 %v3822_v9 }
0x10b6   :  { %3103 = vmatmul.mubr.msk.f32.vlgmr.msra.gmra.mrb[14].mxu0 %vm1027_vm3, %v3827_v35 }
0x10b7   :  { %3170 = vmatprep.mubr.msk.f32.mxu0 %vm3823_vm1, %v3821_v6  ;;  %3513 = vmatpush3.bf16.msra.mxu0 %v4188_v49 }
0x10b8   :  { %3514 = vmatprep.subr.bf16.mxu0 %v3822_v9 }
0x10bb   :  { %3516 = vmatpush3.bf16.msra.mxu0 %v4194_v51 }
0x10bc   :  { %3517 = vmatprep.subr.bf16.mxu0 %v3822_v9 }
0x1189   :  { %v1171_v14 = vpop.f32.mrb[14].mxu0 }
0x118a   :  { %3733 = vtanh.f32 %v1171_v14  ;;  %v3104_v36 = vpop.f32.mrb[15].mxu0  ;;  %v2697_v38 = vmul.f32 -1.442695, %v1171_v14 }
0x118c   :  { %3735 = vpow2.f32 %v2697_v38 }
0x1194   :  { %v3734_v37 = vpop.eup %3733 }
0x1195   :  { %1184 = vrot.lane.b32.xlu1 %v3734_v37, %s3824_s3 }
0x1196   :  { %v3736_v22 = vpop.eup %3735 }
0x1197   :  { %v1178_v39 = vadd.f32 1.0, %v3736_v22 }
0x1199   :  { %3737 = vrcp.f32 %v1178_v39 }
0x11a3   :  { %v3738_v40 = vpop.eup %3737 }
0x11a4   :  { %v1182_v43 = vmul.f32 %v3738_v40, %v1013_v15 }
0x1207   :  { %v1185_v41 = vpop.permute.xlu1 %1184 }
0x1208   :  { %v1187_v42 = vmul.f32 %v3738_v40, %v1185_v41 }
0x120a   :  { %1189 = vrot.lane.b32.xlu1 %v1187_v42, %s3825_s11 }
0x127c   :  { %v1190_v16 = vpop.permute.xlu1 %1189 }
0x127d   :  { %v4176_v44 = vadd.f32 %v1190_v16, %v1182_v43 }
0x127f   :  { %3739 = vtanh.f32 %v4176_v44 }
0x1289   :  { %v3740_v53 = vpop.eup %3739 }
0x128a   :  { %1195 = vrot.lane.b32.xlu0 %v3740_v53, %s3824_s3 }
0x12fc   :  { %v1196_v54 = vpop.permute.xlu0 %1195 }
0x12fd   :  { %v1198_v55 = vmul.f32 %v3738_v40, %v1196_v54 }
0x12ff   :  { %1200 = vrot.lane.b32.xlu1 %v1198_v55, %s3825_s11 }
0x1371   :  { %v1201_v28 = vpop.permute.xlu1 %1200 }
0x1372   :  { %3114 = vmatmul.mubr.msk.f32.vlgmr.msra.gmra.mrb[20].mxu1 %vm421_vm2, %v1201_v28 }
0x1373   :  { %3483 = vmatpush3.bf16.msra.mxu1 %v4130_v20  ;;  %3124 = vmatprep.mubr.msk.f32.mxu1 %vm3823_vm1, %v3821_v6 }
0x1374   :  { %3484 = vmatprep.subr.bf16.mxu1 %v3822_v9 }
0x1377   :  { %3486 = vmatpush3.bf16.msra.mxu1 %v4139_v24 }
0x1378   :  { %3487 = vmatprep.subr.bf16.mxu1 %v3822_v9 }
0x137a   :  { %3125 = vmatmul.mubr.msk.f32.vlgmr.msra.gmra.mrb[22].mxu1 %vm421_vm2, %v1201_v28 }
0x137b   :  { %3489 = vmatpush3.bf16.msra.mxu1 %v4081_v47  ;;  %3159 = vmatprep.mubr.msk.f32.mxu1 %vm3823_vm1, %v3821_v6 }
0x137c   :  { %3490 = vmatprep.subr.bf16.mxu1 %v3822_v9 }
0x137f   :  { %3492 = vmatpush3.bf16.msra.mxu1 %v4083_v52 }
0x1380   :  { %3493 = vmatprep.subr.bf16.mxu1 %v3822_v9 }
0x1383   :  { %3495 = vmatpush3.bf16.msra.mxu1 %v4085_v57 }
0x1384   :  { %3496 = vmatprep.subr.bf16.mxu1 %v3822_v9 }
0x1387   :  { %3498 = vmatpush3.bf16.msra.mxu1 %v4087_v62 }
0x1388   :  { %3499 = vmatprep.subr.bf16.mxu1 %v3822_v9 }
0x138b   :  { %3501 = vmatpush3.bf16.msra.mxu1 %v4089_v3 }
0x138c   :  { %3502 = vmatprep.subr.bf16.mxu1 %v3822_v9 }
0x138f   :  { %3504 = vmatpush3.bf16.msra.mxu1 %v4091_v12 }
0x1390   :  { %3505 = vmatprep.subr.bf16.mxu1 %v3822_v9 }
0x1393   :  { %3507 = vmatpush3.bf16.msra.mxu1 %v4098_v19 }
0x1394   :  { %3508 = vmatprep.subr.bf16.mxu1 %v3822_v9 }
0x1397   :  { %3510 = vmatpush3.bf16.msra.mxu1 %v4102_v25 }
0x1398   :  { %3547 = vmatprep.subr.bf16.mxu1 %v3822_v9 }
0x1445   :  { %v1270_v58 = vpop.f32.mrb[20].mxu1 }
0x1446   :  { %v1271_v59 = vadd.f32 %v4234_v56, %v1270_v58  ;;  %v3115_v60 = vpop.f32.mrb[21].mxu1  ;;  %v1572_v58 = vstv %s1571_s24 }
0x1447   :  { %vm1573_vm10 = vcmp.eq.s32.totalorder %v1572_v58, 1 }
0x1448   :  { %1275 = vst [vmem:[#allocation5 + $0x8] sm:$0xff] %v1271_v59  ;;  %1276 = vmax.xlane.f32.xlu0 %v1271_v59 }
0x14d5   :  { %v1277_v61 = vpop.xlane.xlu0 %1276 }
0x14d6   :  { %vm1278_vm4 = vcmp.eq.f32.partialorder %v1271_v59, %v1277_v61 }
0x14d7   :  { %v1279_v63 = vsel %vm1278_vm4, %v4165_v33, 128 }
0x14d8   :  { %v1281_v0 = vshra.s32 %v1279_v63, 16  ;;  %v1280_v2 = vand.u32 65535, %v1279_v63  ;;  %v2707_v63 = vld [vmem:[%s4460_s10 + $0x10] sm:$0xff] }
0x14da   :  { %v1283_v1 = vcvt.s32.f32 %v1281_v0  ;;  %v1282_v5 = vcvt.s32.f32 %v1280_v2 }
0x14dc   :  { %1284 = vmin.xlane.f32.xlu1 %v1283_v1 }
0x1569   :  { %v1285_v4 = vpop.xlane.xlu1 %1284 }
0x156a   :  { %vm1286_vm5 = vcmp.eq.f32.partialorder %v1283_v1, %v1285_v4  ;;  %v1291_v10 = vcvt.f32.s32 %v1285_v4  ;;  %v4291_v4 = vld [vmem:[#allocation5] sm:$0xff] }
0x156b   :  { %v1287_v7 = vsel %vm1286_vm5, %v1282_v5, inf }
0x156c   :  { %1288 = vmin.xlane.f32.xlu0 %v1287_v7  ;;  %v1292_v15 = vshll.u32 %v1291_v10, 16 }
0x15f9   :  { %v1289_v13 = vpop.xlane.xlu0 %1288 }
0x15fa   :  { %v1290_v26 = vcvt.f32.s32 %v1289_v13 }
0x15fc   :  { %v1293_v18 = vadd.s32 %v1292_v15, %v1290_v26 }
0x15fe   :  { %v1301_v21 = vsel %vm1300_vm6, %v2700_v17, %v1293_v18 }
0x15ff   :  { %1303 = vperm.xlu0 %3684, %v1301_v21  }
0x167e   :  { %v1304_v23 = vpop.permute.xlu0 %1303 }
0x167f   :  { %vm1305_vm7 = vcmp.eq.s32.totalorder %v4165_v33, %v1304_v23 }
0x1680   :  { %3160 = vmatmul.mubr.msk.f32.vlgmr.msra.gmra.mrb[22].mxu1 %vm1305_vm7, %v3827_v35 }
0x1681   :  { %3549 = vmatpush3.bf16.msra.mxu1 %v4188_v49  ;;  %3227 = vmatprep.mubr.msk.f32.mxu1 %vm3823_vm1, %v3821_v6 }
0x1682   :  { %3550 = vmatprep.subr.bf16.mxu1 %v3822_v9 }
0x1685   :  { %3552 = vmatpush3.bf16.msra.mxu1 %v4194_v51 }
0x1686   :  { %3553 = vmatprep.subr.bf16.mxu1 %v3822_v9 }
0x1753   :  { %v1444_v27 = vpop.f32.mrb[22].mxu1 }
0x1754   :  { %3741 = vtanh.f32 %v1444_v27  ;;  %v3161_v8 = vpop.f32.mrb[23].mxu1  ;;  %v2704_v30 = vmul.f32 -1.442695, %v1444_v27 }
0x1756   :  { %3743 = vpow2.f32 %v2704_v30 }
0x175e   :  { %v3742_v29 = vpop.eup %3741 }
0x175f   :  { %1457 = vrot.lane.b32.xlu1 %v3742_v29, %s3824_s3 }
0x1760   :  { %v3744_v31 = vpop.eup %3743 }
0x1761   :  { %v1451_v32 = vadd.f32 1.0, %v3744_v31 }
0x1763   :  { %3745 = vrcp.f32 %v1451_v32 }
0x176d   :  { %v3746_v34 = vpop.eup %3745 }
0x176e   :  { %v1455_v37 = vmul.f32 %v3746_v34, %v4176_v44 }
0x17d1   :  { %v1458_v14 = vpop.permute.xlu1 %1457 }
0x17d2   :  { %v1460_v36 = vmul.f32 %v3746_v34, %v1458_v14 }
0x17d4   :  { %1462 = vrot.lane.b32.xlu1 %v1460_v36, %s3825_s11 }
0x1846   :  { %v1463_v38 = vpop.permute.xlu1 %1462 }
0x1847   :  { %v4252_v22 = vadd.f32 %v1463_v38, %v1455_v37 }
0x1849   :  { %3747 = vtanh.f32 %v4252_v22 }
0x1853   :  { %v3748_v39 = vpop.eup %3747 }
0x1854   :  { %1468 = vrot.lane.b32.xlu0 %v3748_v39, %s3824_s3 }
0x18c6   :  { %v1469_v40 = vpop.permute.xlu0 %1468 }
0x18c7   :  { %v1471_v41 = vmul.f32 %v3746_v34, %v1469_v40 }
0x18c9   :  { %1473 = vrot.lane.b32.xlu1 %v1471_v41, %s3825_s11 }
0x193b   :  { %v1474_v42 = vpop.permute.xlu1 %1473 }
0x193c   :  { %3171 = vmatmul.mubr.msk.f32.vlgmr.msra.gmra.mrb[16].mxu0 %vm421_vm2, %v1474_v42 }
0x193d   :  { %3519 = vmatpush3.bf16.msra.mxu0 %v4130_v20  ;;  %3181 = vmatprep.mubr.msk.f32.mxu0 %vm3823_vm1, %v3821_v6 }
0x193e   :  { %3520 = vmatprep.subr.bf16.mxu0 %v3822_v9 }
0x1941   :  { %3522 = vmatpush3.bf16.msra.mxu0 %v4139_v24 }
0x1942   :  { %3523 = vmatprep.subr.bf16.mxu0 %v3822_v9 }
0x1944   :  { %3182 = vmatmul.mubr.msk.f32.vlgmr.msra.gmra.mrb[18].mxu0 %vm421_vm2, %v1474_v42 }
0x1945   :  { %3525 = vmatpush3.bf16.msra.mxu0 %v4081_v47  ;;  %3216 = vmatprep.mubr.msk.f32.mxu0 %vm3823_vm1, %v3821_v6 }
0x1946   :  { %3526 = vmatprep.subr.bf16.mxu0 %v3822_v9 }
0x1949   :  { %3528 = vmatpush3.bf16.msra.mxu0 %v4083_v52 }
0x194a   :  { %3529 = vmatprep.subr.bf16.mxu0 %v3822_v9 }
0x194d   :  { %3531 = vmatpush3.bf16.msra.mxu0 %v4085_v57 }
0x194e   :  { %3532 = vmatprep.subr.bf16.mxu0 %v3822_v9 }
0x1951   :  { %3534 = vmatpush3.bf16.msra.mxu0 %v4087_v62 }
0x1952   :  { %3535 = vmatprep.subr.bf16.mxu0 %v3822_v9 }
0x1955   :  { %3537 = vmatpush3.bf16.msra.mxu0 %v4089_v3 }
0x1956   :  { %3538 = vmatprep.subr.bf16.mxu0 %v3822_v9 }
0x1959   :  { %3540 = vmatpush3.bf16.msra.mxu0 %v4091_v12 }
0x195a   :  { %3541 = vmatprep.subr.bf16.mxu0 %v3822_v9 }
0x195d   :  { %3543 = vmatpush3.bf16.msra.mxu0 %v4098_v19 }
0x195e   :  { %3544 = vmatprep.subr.bf16.mxu0 %v3822_v9 }
0x1961   :  { %3546 = vmatpush3.bf16.msra.mxu0 %v4102_v25 }
0x1962   :  { %3583 = vmatprep.subr.bf16.mxu0 %v3822_v9 }
0x1a0f   :  { %v1543_v6 = vpop.f32.mrb[16].mxu0 }
0x1a10   :  { %v1544_v43 = vadd.f32 %v4234_v56, %v1543_v6  ;;  %v3172_v16 = vpop.f32.mrb[17].mxu0 }
0x1a12   :  { %1548 = vst [vmem:[#allocation5 + $0x10] sm:$0xff] %v1544_v43  ;;  %1549 = vmax.xlane.f32.xlu0 %v1544_v43 }
0x1a9f   :  { %v1550_v44 = vpop.xlane.xlu0 %1549 }
0x1aa0   :  { %vm1551_vm8 = vcmp.eq.f32.partialorder %v1544_v43, %v1550_v44  ;;  %v1845_v43 = vstv %s1844_s26 }
0x1aa1   :  { %v1552_v45 = vsel %vm1551_vm8, %v4165_v33, 128  ;;  %vm1846_vm14 = vcmp.eq.s32.totalorder %v1845_v43, 1 }
0x1aa2   :  { %v1554_v46 = vshra.s32 %v1552_v45, 16  ;;  %v1553_v50 = vand.u32 65535, %v1552_v45 }
0x1aa4   :  { %v1556_v48 = vcvt.s32.f32 %v1554_v46  ;;  %v1555_v54 = vcvt.s32.f32 %v1553_v50  ;;  %v2714_v46 = vld [vmem:[%s4460_s10 + $0x18] sm:$0xff] }
0x1aa6   :  { %1557 = vmin.xlane.f32.xlu1 %v1556_v48 }
0x1b33   :  { %v1558_v53 = vpop.xlane.xlu1 %1557 }
0x1b34   :  { %vm1559_vm9 = vcmp.eq.f32.partialorder %v1556_v48, %v1558_v53  ;;  %v1564_v28 = vcvt.f32.s32 %v1558_v53 }
0x1b35   :  { %v1560_v55 = vsel %vm1559_vm9, %v1555_v54, inf }
0x1b36   :  { %1561 = vmin.xlane.f32.xlu0 %v1560_v55  ;;  %v1565_v60 = vshll.u32 %v1564_v28, 16 }
0x1bc3   :  { %v1562_v59 = vpop.xlane.xlu0 %1561 }
0x1bc4   :  { %v1563_v61 = vcvt.f32.s32 %v1562_v59 }
0x1bc6   :  { %v1566_v0 = vadd.s32 %v1565_v60, %v1563_v61 }
0x1bc8   :  { %v1574_v1 = vsel %vm1573_vm10, %v2707_v63, %v1566_v0 }
0x1bc9   :  { %1576 = vperm.xlu0 %3684, %v1574_v1  }
0x1c48   :  { %v1577_v2 = vpop.permute.xlu0 %1576 }
0x1c49   :  { %vm1578_vm11 = vcmp.eq.s32.totalorder %v4165_v33, %v1577_v2 }
0x1c4a   :  { %3217 = vmatmul.mubr.msk.f32.vlgmr.msra.gmra.mrb[18].mxu0 %vm1578_vm11, %v3827_v35 }
0x1c4b   :  { %3585 = vmatpush3.bf16.msra.mxu0 %v4188_v49  ;;  %3284 = vmatprep.mubr.msk.f32.mxu0 %vm3823_vm1, %v4291_v4 }
0x1c4c   :  { %3586 = vmatprep.subr.bf16.mxu0 %v3822_v9 }
0x1c4f   :  { %3588 = vmatpush3.bf16.msra.mxu0 %v4194_v51 }
0x1c50   :  { %3589 = vmatprep.subr.bf16.mxu0 %v3822_v9 }
0x1d1d   :  { %v1717_v5 = vpop.f32.mrb[18].mxu0 }
0x1d1e   :  { %3749 = vtanh.f32 %v1717_v5  ;;  %v3218_v7 = vpop.f32.mrb[19].mxu0  ;;  %v2711_v11 = vmul.f32 -1.442695, %v1717_v5 }
0x1d20   :  { %3751 = vpow2.f32 %v2711_v11 }
0x1d28   :  { %v3750_v10 = vpop.eup %3749 }
0x1d29   :  { %1730 = vrot.lane.b32.xlu1 %v3750_v10, %s3824_s3 }
0x1d2a   :  { %v3752_v13 = vpop.eup %3751 }
0x1d2b   :  { %v1724_v15 = vadd.f32 1.0, %v3752_v13 }
0x1d2d   :  { %3753 = vrcp.f32 %v1724_v15 }
0x1d37   :  { %v3754_v26 = vpop.eup %3753 }
0x1d38   :  { %v1728_v21 = vmul.f32 %v3754_v26, %v4252_v22 }
0x1d9b   :  { %v1731_v17 = vpop.permute.xlu1 %1730 }
0x1d9c   :  { %v1733_v18 = vmul.f32 %v3754_v26, %v1731_v17 }
0x1d9e   :  { %1735 = vrot.lane.b32.xlu1 %v1733_v18, %s3825_s11 }
0x1e10   :  { %v1736_v23 = vpop.permute.xlu1 %1735 }
0x1e11   :  { %v4301_v27 = vadd.f32 %v1736_v23, %v1728_v21 }
0x1e13   :  { %3755 = vtanh.f32 %v4301_v27 }
0x1e1d   :  { %v3756_v8 = vpop.eup %3755 }
0x1e1e   :  { %1741 = vrot.lane.b32.xlu0 %v3756_v8, %s3824_s3 }
0x1e90   :  { %v1742_v29 = vpop.permute.xlu0 %1741 }
0x1e91   :  { %v1744_v30 = vmul.f32 %v3754_v26, %v1742_v29 }
0x1e93   :  { %1746 = vrot.lane.b32.xlu1 %v1744_v30, %s3825_s11 }
0x1f05   :  { %v1747_v31 = vpop.permute.xlu1 %1746 }
0x1f06   :  { %3228 = vmatmul.mubr.msk.f32.vlgmr.msra.gmra.mrb[24].mxu1 %vm421_vm2, %v1747_v31 }
0x1f07   :  { %3555 = vmatpush3.bf16.msra.mxu1 %v4130_v20  ;;  %3238 = vmatprep.mubr.msk.f32.mxu1 %vm3823_vm1, %v4291_v4 }
0x1f08   :  { %3556 = vmatprep.subr.bf16.mxu1 %v3822_v9 }
0x1f0b   :  { %3558 = vmatpush3.bf16.msra.mxu1 %v4139_v24 }
0x1f0c   :  { %3559 = vmatprep.subr.bf16.mxu1 %v3822_v9 }
0x1f0e   :  { %3239 = vmatmul.mubr.msk.f32.vlgmr.msra.gmra.mrb[26].mxu1 %vm421_vm2, %v1747_v31 }
0x1f0f   :  { %3561 = vmatpush3.bf16.msra.mxu1 %v4081_v47  ;;  %3273 = vmatprep.mubr.msk.f32.mxu1 %vm3823_vm1, %v4291_v4 }
0x1f10   :  { %3562 = vmatprep.subr.bf16.mxu1 %v3822_v9 }
0x1f13   :  { %3564 = vmatpush3.bf16.msra.mxu1 %v4083_v52 }
0x1f14   :  { %3565 = vmatprep.subr.bf16.mxu1 %v3822_v9 }
0x1f17   :  { %3567 = vmatpush3.bf16.msra.mxu1 %v4085_v57 }
0x1f18   :  { %3568 = vmatprep.subr.bf16.mxu1 %v3822_v9 }
0x1f1b   :  { %3570 = vmatpush3.bf16.msra.mxu1 %v4087_v62 }
0x1f1c   :  { %3571 = vmatprep.subr.bf16.mxu1 %v3822_v9 }
0x1f1f   :  { %3573 = vmatpush3.bf16.msra.mxu1 %v4089_v3 }
0x1f20   :  { %3574 = vmatprep.subr.bf16.mxu1 %v3822_v9 }
0x1f23   :  { %3576 = vmatpush3.bf16.msra.mxu1 %v4091_v12 }
0x1f24   :  { %3577 = vmatprep.subr.bf16.mxu1 %v3822_v9 }
0x1f27   :  { %3579 = vmatpush3.bf16.msra.mxu1 %v4098_v19 }
0x1f28   :  { %3580 = vmatprep.subr.bf16.mxu1 %v3822_v9 }
0x1f2b   :  { %3582 = vmatpush3.bf16.msra.mxu1 %v4102_v25 }
0x1f2c   :  { %3619 = vmatprep.subr.bf16.mxu1 %v3822_v9 }
0x1fd9   :  { %v1816_v32 = vpop.f32.mrb[24].mxu1 }
0x1fda   :  { %v1817_v34 = vadd.f32 %v4234_v56, %v1816_v32  ;;  %v3229_v14 = vpop.f32.mrb[25].mxu1 }
0x1fdc   :  { %1821 = vst [vmem:[#allocation5 + $0x18] sm:$0xff] %v1817_v34  ;;  %1822 = vmax.xlane.f32.xlu0 %v1817_v34 }
0x2069   :  { %v1823_v36 = vpop.xlane.xlu0 %1822 }
0x206a   :  { %vm1824_vm12 = vcmp.eq.f32.partialorder %v1817_v34, %v1823_v36  ;;  %v2118_v34 = vstv %s2117_s0 }
0x206b   :  { %v1825_v37 = vsel %vm1824_vm12, %v4165_v33, 128  ;;  %vm2119_vm4 = vcmp.eq.s32.totalorder %v2118_v34, 1 }
0x206c   :  { %v1827_v38 = vshra.s32 %v1825_v37, 16  ;;  %v1826_v39 = vand.u32 65535, %v1825_v37 }
0x206e   :  { %v1829_v22 = vcvt.s32.f32 %v1827_v38  ;;  %v1828_v41 = vcvt.s32.f32 %v1826_v39  ;;  %v2721_v38 = vld [vmem:[%s4460_s10 + $0x20] sm:$0xff] }
0x2070   :  { %1830 = vmin.xlane.f32.xlu1 %v1829_v22 }
0x20fd   :  { %v1831_v40 = vpop.xlane.xlu1 %1830 }
0x20fe   :  { %vm1832_vm13 = vcmp.eq.f32.partialorder %v1829_v22, %v1831_v40  ;;  %v1837_v6 = vcvt.f32.s32 %v1831_v40 }
0x20ff   :  { %v1833_v42 = vsel %vm1832_vm13, %v1828_v41, inf }
0x2100   :  { %1834 = vmin.xlane.f32.xlu0 %v1833_v42  ;;  %v1838_v44 = vshll.u32 %v1837_v6, 16 }
0x218d   :  { %v1835_v16 = vpop.xlane.xlu0 %1834 }
0x218e   :  { %v1836_v45 = vcvt.f32.s32 %v1835_v16 }
0x2190   :  { %v1839_v48 = vadd.s32 %v1838_v44, %v1836_v45 }
0x2192   :  { %v1847_v50 = vsel %vm1846_vm14, %v2714_v46, %v1839_v48 }
0x2193   :  { %1849 = vperm.xlu0 %3684, %v1847_v50  }
0x2212   :  { %v1850_v53 = vpop.permute.xlu0 %1849 }
0x2213   :  { %vm1851_vm15 = vcmp.eq.s32.totalorder %v4165_v33, %v1850_v53 }
0x2214   :  { %3274 = vmatmul.mubr.msk.f32.vlgmr.msra.gmra.mrb[26].mxu1 %vm1851_vm15, %v3827_v35 }
0x2215   :  { %3621 = vmatpush3.bf16.msra.mxu1 %v4188_v49  ;;  %3341 = vmatprep.mubr.msk.f32.mxu1 %vm3823_vm1, %v4291_v4 }
0x2216   :  { %3622 = vmatprep.subr.bf16.mxu1 %v3822_v9 }
0x2219   :  { %3624 = vmatpush3.bf16.msra.mxu1 %v4194_v51 }
0x221a   :  { %3625 = vmatprep.subr.bf16.mxu1 %v3822_v9 }
0x22e7   :  { %v1990_v54 = vpop.f32.mrb[26].mxu1 }
0x22e8   :  { %3757 = vtanh.f32 %v1990_v54  ;;  %v3275_v55 = vpop.f32.mrb[27].mxu1  ;;  %v2718_v58 = vmul.f32 -1.442695, %v1990_v54 }
0x22ea   :  { %3759 = vpow2.f32 %v2718_v58  ;;  %v2391_v58 = vstv %s2390_s6 }
0x22eb   :  { %vm2392_vm7 = vcmp.eq.s32.totalorder %v2391_v58, 1 }
0x22f2   :  { %v3758_v28 = vpop.eup %3757 }
0x22f3   :  { %2003 = vrot.lane.b32.xlu1 %v3758_v28, %s3824_s3 }
0x22f4   :  { %v3760_v59 = vpop.eup %3759 }
0x22f5   :  { %v1997_v60 = vadd.f32 1.0, %v3760_v59 }
0x22f7   :  { %3761 = vrcp.f32 %v1997_v60 }
0x2301   :  { %v3762_v61 = vpop.eup %3761 }
0x2302   :  { %v2001_v1 = vmul.f32 %v3762_v61, %v4301_v27 }
0x2365   :  { %v2004_v63 = vpop.permute.xlu1 %2003 }
0x2366   :  { %v2006_v0 = vmul.f32 %v3762_v61, %v2004_v63  ;;  %v2728_v63 = vld [vmem:[%s4460_s10 + $0x28] sm:$0xff]  ;;  %s3828_s10 = smov [#allocation5]  }
0x2367   :  { %s2646_s16 = sshll.u32 %s3828_s10, 4  ;;  %s2647_s16 = int_to_ptr.vmem [resolvable:$true] %s2646_s16 }
0x2368   :  { %2008 = vrot.lane.b32.xlu1 %v2006_v0, %s3825_s11  ;;  %s3794_s1 = scalar_lea.vmem %s2647_s16, 896  ;;  %p3799_p11 = scmp.lt.s32.totalorder %s2647_s16, %s2647_s16 }
0x2369   :  { %p3795_p10 = scmp.ne.s32.totalorder %s2647_s16, %s3794_s1  ;;  %p3800_p12 = scmp.lt.s32.totalorder %s3794_s1, %s3794_s1 }
0x236b   :  { %p3801_p13 = por %p3800_p12, %p3799_p11 }
0x236d   :  { %p3802_p0 = pnand %p3801_p13, %p3795_p10 }
0x23da   :  { %v2009_v2 = vpop.permute.xlu1 %2008 }
0x23db   :  { %v4348_v5 = vadd.f32 %v2009_v2, %v2001_v1 }
0x23dd   :  { %3763 = vtanh.f32 %v4348_v5 }
0x23e7   :  { %v3764_v7 = vpop.eup %3763 }
0x23e8   :  { %2014 = vrot.lane.b32.xlu0 %v3764_v7, %s3824_s3 }
0x245a   :  { %v2015_v10 = vpop.permute.xlu0 %2014 }
0x245b   :  { %v2017_v11 = vmul.f32 %v3762_v61, %v2015_v10 }
0x245d   :  { %2019 = vrot.lane.b32.xlu1 %v2017_v11, %s3825_s11 }
0x24cf   :  { %v2020_v13 = vpop.permute.xlu1 %2019 }
0x24d0   :  { %3285 = vmatmul.mubr.msk.f32.vlgmr.msra.gmra.mrb[20].mxu0 %vm421_vm2, %v2020_v13 }
0x24d1   :  { %3591 = vmatpush3.bf16.msra.mxu0 %v4130_v20  ;;  %3295 = vmatprep.mubr.msk.f32.mxu0 %vm3823_vm1, %v4291_v4 }
0x24d2   :  { %3592 = vmatprep.subr.bf16.mxu0 %v3822_v9 }
0x24d5   :  { %3594 = vmatpush3.bf16.msra.mxu0 %v4139_v24 }
0x24d6   :  { %3595 = vmatprep.subr.bf16.mxu0 %v3822_v9 }
0x24d8   :  { %3296 = vmatmul.mubr.msk.f32.vlgmr.msra.gmra.mrb[22].mxu0 %vm421_vm2, %v2020_v13 }
0x24d9   :  { %3597 = vmatpush3.bf16.msra.mxu0 %v4081_v47  ;;  %3330 = vmatprep.mubr.msk.f32.mxu0 %vm3823_vm1, %v4291_v4 }
0x24da   :  { %3598 = vmatprep.subr.bf16.mxu0 %v3822_v9 }
0x24dd   :  { %3600 = vmatpush3.bf16.msra.mxu0 %v4083_v52 }
0x24de   :  { %3601 = vmatprep.subr.bf16.mxu0 %v3822_v9 }
0x24e1   :  { %3603 = vmatpush3.bf16.msra.mxu0 %v4085_v57 }
0x24e2   :  { %3604 = vmatprep.subr.bf16.mxu0 %v3822_v9 }
0x24e5   :  { %3606 = vmatpush3.bf16.msra.mxu0 %v4087_v62 }
0x24e6   :  { %3607 = vmatprep.subr.bf16.mxu0 %v3822_v9 }
0x24e9   :  { %3609 = vmatpush3.bf16.msra.mxu0 %v4089_v3 }
0x24ea   :  { %3610 = vmatprep.subr.bf16.mxu0 %v3822_v9 }
0x24ed   :  { %3612 = vmatpush3.bf16.msra.mxu0 %v4091_v12 }
0x24ee   :  { %3613 = vmatprep.subr.bf16.mxu0 %v3822_v9 }
0x24f1   :  { %3615 = vmatpush3.bf16.msra.mxu0 %v4098_v19 }
0x24f2   :  { %3616 = vmatprep.subr.bf16.mxu0 %v3822_v9 }
0x24f5   :  { %3618 = vmatpush3.bf16.msra.mxu0 %v4102_v25 }
0x24f6   :  { %3655 = vmatprep.subr.bf16.mxu0 %v3822_v9 }
0x25a3   :  { %v2089_v15 = vpop.f32.mrb[20].mxu0 }
0x25a4   :  { %v2090_v26 = vadd.f32 %v4234_v56, %v2089_v15  ;;  %v3286_v17 = vpop.f32.mrb[21].mxu0 }
0x25a6   :  { %2094 = vst [vmem:[#allocation5 + $0x20] sm:$0xff] %v2090_v26  ;;  %2095 = vmax.xlane.f32.xlu0 %v2090_v26 }
0x2633   :  { %v2096_v18 = vpop.xlane.xlu0 %2095 }
0x2634   :  { %vm2097_vm0 = vcmp.eq.f32.partialorder %v2090_v26, %v2096_v18 }
0x2635   :  { %v2098_v21 = vsel %vm2097_vm0, %v4165_v33, 128 }
0x2636   :  { %v2100_v23 = vshra.s32 %v2098_v21, 16  ;;  %v2099_v8 = vand.u32 65535, %v2098_v21 }
0x2638   :  { %v2102_v27 = vcvt.s32.f32 %v2100_v23  ;;  %v2101_v30 = vcvt.s32.f32 %v2099_v8 }
0x263a   :  { %2103 = vmin.xlane.f32.xlu1 %v2102_v27 }
0x26c7   :  { %v2104_v29 = vpop.xlane.xlu1 %2103 }
0x26c8   :  { %vm2105_vm3 = vcmp.eq.f32.partialorder %v2102_v27, %v2104_v29  ;;  %v2110_v32 = vcvt.f32.s32 %v2104_v29 }
0x26c9   :  { %v2106_v31 = vsel %vm2105_vm3, %v2101_v30, inf }
0x26ca   :  { %2107 = vmin.xlane.f32.xlu0 %v2106_v31  ;;  %v2111_v36 = vshll.u32 %v2110_v32, 16 }
0x2757   :  { %v2108_v14 = vpop.xlane.xlu0 %2107 }
0x2758   :  { %v2109_v37 = vcvt.f32.s32 %v2108_v14 }
0x275a   :  { %v2112_v22 = vadd.s32 %v2111_v36, %v2109_v37 }
0x275c   :  { %v2120_v39 = vsel %vm2119_vm4, %v2721_v38, %v2112_v22 }
0x275d   :  { %2122 = vperm.xlu0 %3684, %v2120_v39  }
0x27dc   :  { %v2123_v40 = vpop.permute.xlu0 %2122 }
0x27dd   :  { %vm2124_vm5 = vcmp.eq.s32.totalorder %v4165_v33, %v2123_v40 }
0x27de   :  { %3331 = vmatmul.mubr.msk.f32.vlgmr.msra.gmra.mrb[22].mxu0 %vm2124_vm5, %v3827_v35 }
0x27df   :  { %3657 = vmatpush3.bf16.msra.mxu0 %v4188_v49  ;;  %3398 = vmatprep.mubr.msk.f32.mxu0 %vm3823_vm1, %v4291_v4 }
0x27e0   :  { %3658 = vmatprep.subr.bf16.mxu0 %v3822_v9 }
0x27e3   :  { %3660 = vmatpush3.bf16.msra.mxu0 %v4194_v51 }
0x28b1   :  { %v2263_v41 = vpop.f32.mrb[22].mxu0 }
0x28b2   :  { %3765 = vtanh.f32 %v2263_v41  ;;  %v3332_v42 = vpop.f32.mrb[23].mxu0  ;;  %v2725_v43 = vmul.f32 -1.442695, %v2263_v41 }
0x28b4   :  { %3767 = vpow2.f32 %v2725_v43 }
0x28bc   :  { %v3766_v6 = vpop.eup %3765 }
0x28bd   :  { %2276 = vrot.lane.b32.xlu1 %v3766_v6, %s3824_s3 }
0x28be   :  { %v3768_v16 = vpop.eup %3767 }
0x28bf   :  { %v2270_v44 = vadd.f32 1.0, %v3768_v16 }
0x28c1   :  { %3769 = vrcp.f32 %v2270_v44 }
0x28cb   :  { %v3770_v45 = vpop.eup %3769 }
0x28cc   :  { %v2274_v48 = vmul.f32 %v3770_v45, %v4348_v5 }
0x292f   :  { %v2277_v49 = vpop.permute.xlu1 %2276 }
0x2930   :  { %v2279_v46 = vmul.f32 %v3770_v45, %v2277_v49 }
0x2932   :  { %2281 = vrot.lane.b32.xlu1 %v2279_v46, %s3825_s11 }
0x29a4   :  { %v2282_v50 = vpop.permute.xlu1 %2281 }
0x29a5   :  { %v4394_v51 = vadd.f32 %v2282_v50, %v2274_v48 }
0x29a7   :  { %3771 = vtanh.f32 %v4394_v51 }
0x29b1   :  { %v3772_v53 = vpop.eup %3771 }
0x29b2   :  { %2287 = vrot.lane.b32.xlu0 %v3772_v53, %s3824_s3 }
0x2a24   :  { %v2288_v54 = vpop.permute.xlu0 %2287 }
0x2a25   :  { %v2290_v55 = vmul.f32 %v3770_v45, %v2288_v54 }
0x2a27   :  { %2292 = vrot.lane.b32.xlu1 %v2290_v55, %s3825_s11 }
0x2a99   :  { %v2293_v28 = vpop.permute.xlu1 %2292 }
0x2a9a   :  { %3342 = vmatmul.mubr.msk.f32.vlgmr.msra.gmra.mrb[28].mxu1 %vm421_vm2, %v2293_v28 }
0x2a9b   :  { %3627 = vmatpush3.bf16.msra.mxu1 %v4130_v20  ;;  %3352 = vmatprep.mubr.msk.f32.mxu1 %vm3823_vm1, %v4291_v4 }
0x2a9c   :  { %3628 = vmatprep.subr.bf16.mxu1 %v3822_v9 }
0x2a9f   :  { %3630 = vmatpush3.bf16.msra.mxu1 %v4139_v24 }
0x2aa0   :  { %3631 = vmatprep.subr.bf16.mxu1 %v3822_v9 }
0x2aa2   :  { %3353 = vmatmul.mubr.msk.f32.vlgmr.msra.gmra.mrb[30].mxu1 %vm421_vm2, %v2293_v28 }
0x2aa3   :  { %3633 = vmatpush3.bf16.msra.mxu1 %v4081_v47  ;;  %3387 = vmatprep.mubr.msk.f32.mxu1 %vm3823_vm1, %v4291_v4 }
0x2aa4   :  { %3634 = vmatprep.subr.bf16.mxu1 %v3822_v9 }
0x2aa7   :  { %3636 = vmatpush3.bf16.msra.mxu1 %v4083_v52 }
0x2aa8   :  { %3637 = vmatprep.subr.bf16.mxu1 %v3822_v9 }
0x2aab   :  { %3639 = vmatpush3.bf16.msra.mxu1 %v4085_v57 }
0x2aac   :  { %3640 = vmatprep.subr.bf16.mxu1 %v3822_v9 }
0x2aaf   :  { %3642 = vmatpush3.bf16.msra.mxu1 %v4087_v62 }
0x2ab0   :  { %3643 = vmatprep.subr.bf16.mxu1 %v3822_v9 }
0x2ab3   :  { %3645 = vmatpush3.bf16.msra.mxu1 %v4089_v3 }
0x2ab4   :  { %3646 = vmatprep.subr.bf16.mxu1 %v3822_v9 }
0x2ab7   :  { %3648 = vmatpush3.bf16.msra.mxu1 %v4091_v12 }
0x2ab8   :  { %3649 = vmatprep.subr.bf16.mxu1 %v3822_v9 }
0x2abb   :  { %3651 = vmatpush3.bf16.msra.mxu1 %v4098_v19 }
0x2abc   :  { %3652 = vmatprep.subr.bf16.mxu1 %v3822_v9 }
0x2abf   :  { %3654 = vmatpush3.bf16.msra.mxu1 %v4102_v25 }
0x2b6d   :  { %v2362_v47 = vpop.f32.mrb[28].mxu1 }
0x2b6e   :  { %v2363_v52 = vadd.f32 %v4234_v56, %v2362_v47  ;;  %v3343_v57 = vpop.f32.mrb[29].mxu1 }
0x2b70   :  { %2367 = vst [vmem:[#allocation5 + $0x28] sm:$0xff] %v2363_v52  ;;  %2368 = vmax.xlane.f32.xlu0 %v2363_v52 }
0x2bfd   :  { %v2369_v62 = vpop.xlane.xlu0 %2368 }
0x2bfe   :  { %vm2370_vm1 = vcmp.eq.f32.partialorder %v2363_v52, %v2369_v62 }
0x2bff   :  { %v2371_v3 = vsel %vm2370_vm1, %v4165_v33, 128 }
0x2c00   :  { %v2373_v20 = vshra.s32 %v2371_v3, 16  ;;  %v2372_v24 = vand.u32 65535, %v2371_v3 }
0x2c02   :  { %v2375_v12 = vcvt.s32.f32 %v2373_v20  ;;  %v2374_v19 = vcvt.s32.f32 %v2372_v24 }
0x2c04   :  { %2376 = vmin.xlane.f32.xlu1 %v2375_v12 }
0x2c91   :  { %v2377_v4 = vpop.xlane.xlu1 %2376 }
0x2c92   :  { %vm2378_vm6 = vcmp.eq.f32.partialorder %v2375_v12, %v2377_v4  ;;  %v2383_v25 = vcvt.f32.s32 %v2377_v4 }
0x2c93   :  { %v2379_v9 = vsel %vm2378_vm6, %v2374_v19, inf }
0x2c94   :  { %2380 = vmin.xlane.f32.xlu0 %v2379_v9  ;;  %v2384_v60 = vshll.u32 %v2383_v25, 16 }
0x2d21   :  { %v2381_v59 = vpop.xlane.xlu0 %2380 }
0x2d22   :  { %v2382_v61 = vcvt.f32.s32 %v2381_v59 }
0x2d24   :  { %v2385_v0 = vadd.s32 %v2384_v60, %v2382_v61 }
0x2d26   :  { %v2393_v1 = vsel %vm2392_vm7, %v2728_v63, %v2385_v0 }
0x2d27   :  { %2395 = vperm.xlu0 %3684, %v2393_v1  }
0x2da6   :  { %v2396_v2 = vpop.permute.xlu0 %2395 }
0x2da7   :  { %vm2397_vm8 = vcmp.eq.s32.totalorder %v4165_v33, %v2396_v2 }
0x2da8   :  { %3388 = vmatmul.mubr.msk.f32.vlgmr.msra.gmra.mrb[30].mxu1 %vm2397_vm8, %v3827_v35 }
0x2e7b   :  { %v2536_v5 = vpop.f32.mrb[30].mxu1 }
0x2e7c   :  { %3773 = vtanh.f32 %v2536_v5  ;;  %v3389_v7 = vpop.f32.mrb[31].mxu1  ;;  %v2732_v11 = vmul.f32 -1.442695, %v2536_v5 }
0x2e7e   :  { %3775 = vpow2.f32 %v2732_v11 }
0x2e86   :  { %v3774_v10 = vpop.eup %3773 }
0x2e87   :  { %2549 = vrot.lane.b32.xlu1 %v3774_v10, %s3824_s3 }
0x2e88   :  { %v3776_v13 = vpop.eup %3775 }
0x2e89   :  { %v2543_v15 = vadd.f32 1.0, %v3776_v13 }
0x2e8b   :  { %3777 = vrcp.f32 %v2543_v15 }
0x2e95   :  { %v3778_v26 = vpop.eup %3777 }
0x2e96   :  { %v2547_v33 = vmul.f32 %v3778_v26, %v4394_v51 }
0x2ef9   :  { %v2550_v17 = vpop.permute.xlu1 %2549 }
0x2efa   :  { %v2552_v18 = vmul.f32 %v3778_v26, %v2550_v17 }
0x2efc   :  { %2554 = vrot.lane.b32.xlu1 %v2552_v18, %s3825_s11 }
0x2f6e   :  { %v2555_v21 = vpop.permute.xlu1 %2554 }
0x2f6f   :  { %v2557_v35 = vadd.f32 %v2555_v21, %v2547_v33 }
0x2f71   :  { %3779 = vtanh.f32 %v2557_v35 }
0x2f7b   :  { %v3780_v23 = vpop.eup %3779 }
0x2f7c   :  { %2560 = vrot.lane.b32.xlu0 %v3780_v23, %s3824_s3 }
0x2fee   :  { %v2561_v27 = vpop.permute.xlu0 %2560 }
0x2fef   :  { %v2563_v8 = vmul.f32 %v3778_v26, %v2561_v27 }
0x2ff1   :  { %2565 = vrot.lane.b32.xlu1 %v2563_v8, %s3825_s11 }
0x3063   :  { %v2566_v29 = vpop.permute.xlu1 %2565 }
0x3064   :  { %3399 = vmatmul.mubr.msk.f32.vlgmr.msra.gmra.mrb[24].mxu0 %vm421_vm2, %v2566_v29 }
0x3137   :  { %v2635_v30 = vpop.f32.mrb[24].mxu0 }
0x3138   :  { %v2636_v31 = vadd.f32 %v4234_v56, %v2635_v30  ;;  %v3400_v32 = vpop.f32.mrb[25].mxu0 }
0x313a   :  { %2640 = vst [vmem:[#allocation5 + $0x30] sm:$0xff] %v2636_v31 }
0x313b   :  { %3805 = shalt.err (!%p3802_p0)
}
0x313c   :  { %s3806_s17 = scalar_lea.hbm %s4462_s12, 896 }
0x313d   :  { %p3807_p1 = scmp.ne.s32.totalorder %s4462_s12, %s3806_s17  ;;  %p3810_p2 = scmp.lt.u32.totalorder %s3806_s17, %s4462_s12 }
0x313f   :  { %p3812_p3 = pnand %p3810_p2, %p3807_p1 }
0x3141   :  { %3815 = shalt.err (!%p3812_p3)
}
0x3142   :  { %s3829_s9 = smov 128   ;;  %s3830_s5 = smov 8  }
0x3143   :  { %2652 = dma.vmem_to_hbm [thread:$0]  %s2647_s16, 896, %s4462_s12, [#allocation3], %s3829_s9, %s3829_s9, %s3830_s5  }
0x3144   :  { %3818 = dma.done.wait [#allocation3], 896  }
0x3145   :  { %3819 = vsyncadd [#allocation3], 4294966400 }
0x3146   :  { %2656 = vsyncpa [#allocation3], 1 }
0x3147   :  { %2657 = vsyncpa [#allocation4], 1 }

</bundles_post_ra>
